<compile_context>
chip_gen: v6e
topology: v6e:2x2x1
jax: 0.10.0
libtpu: 0.0.40
codegen_flags: <defaults>
</compile_context>

<pallas_src>
import functools

import jax
import jax.numpy as jnp
from jax.experimental import pallas as pl
from jax.experimental.pallas import tpu as pltpu

# ----------------------------- "cfg" constants -------------------------------
CFG_RELPN_NEGATIVE_OVERLAP = 0.3
CFG_RELPN_POSITIVE_OVERLAP = 0.7
CFG_RELPN_CLOBBER_POSITIVES = False   # hard-coded False path below
CFG_RELPN_FG_FRACTION = 0.5
CFG_RELPN_BATCHSIZE = 8
CFG_MAX_ROI_PAIR_NUMBER = 16
NUM_FG_CAP = int(CFG_RELPN_FG_FRACTION * CFG_RELPN_BATCHSIZE)

# Module "parameters" (from __init__): generate_anchors(scales) -> (A, 4) anchors.
# They are unused by this forward path but initialized deterministically anyway.
FEAT_STRIDE = 16
ANCHOR_SCALES = jnp.array([8.0, 16.0, 32.0], dtype=jnp.float32)


def generate_anchors_det(base_size=16, ratios=(0.5, 1.0, 2.0), scales=ANCHOR_SCALES):
    # deterministic synthetic re-implementation of generate_anchors (shapes only matter)
    base = jnp.array([0.0, 0.0, base_size - 1.0, base_size - 1.0])
    w = base[2] - base[0] + 1.0
    h = base[3] - base[1] + 1.0
    cx = base[0] + 0.5 * (w - 1.0)
    cy = base[1] + 0.5 * (h - 1.0)
    anchors = []
    for r in ratios:
        size = w * h
        ws = jnp.round(jnp.sqrt(size / r))
        hs = jnp.round(ws * r)
        for s in scales:
            wss = ws * s
            hss = hs * s
            anchors.append(jnp.stack([cx - 0.5 * (wss - 1.0), cy - 0.5 * (hss - 1.0),
                                      cx + 0.5 * (wss - 1.0), cy + 0.5 * (hss - 1.0)]))
    return jnp.stack(anchors, axis=0)  # (9, 4)


ANCHORS = generate_anchors_det()


# ------------------------------ Pallas kernel --------------------------------
def _anchor_target_kernel(roi_ref, gt_ref, score_ref, labels_ref, stats_ref, *, n_real):
    # roi_ref:    (Bc, 8, Np)  subject box (rows 0..3) + object box (rows 4..7), pairs on lanes
    # gt_ref:     (Bc, K, 8)   gt subject box (4) + gt object box (4), zero-padded rows
    # score_ref:  (Bc, 1, Np)  relpn classification score per pair (zero in padded lanes)
    # labels_ref: (Bc, 1, Np)  labels in {-1, 0, 1}; lanes >= n_real are -1
    # stats_ref:  (Bc, 8, 128) rows 0..5 (lane-broadcast) = [sum_fg, sum_bg, nrights_fg,
    #                          nrights_bg, nfg_pre_correct, n_idx_fg]
    f32 = jnp.float32
    Bc = roi_ref.shape[0]
    Np = roi_ref.shape[2]

    roi = roi_ref[...].astype(f32)        # (Bc, 8, Np)
    gt = gt_ref[...].astype(f32)          # (Bc, K, 8)
    scores = score_ref[...].astype(f32)   # (Bc, 1, Np)

    def iou_part(off):
        ax1 = roi[:, off + 0:off + 1, :]  # (Bc, 1, Np)
        ay1 = roi[:, off + 1:off + 2, :]
        ax2 = roi[:, off + 2:off + 3, :]
        ay2 = roi[:, off + 3:off + 4, :]
        gx1 = gt[:, :, off + 0:off + 1]   # (Bc, K, 1)
        gy1 = gt[:, :, off + 1:off + 2]
        gx2 = gt[:, :, off + 2:off + 3]
        gy2 = gt[:, :, off + 3:off + 4]
        aw = ax2 - ax1 + 1.0
        ah = ay2 - ay1 + 1.0
        gw = gx2 - gx1 + 1.0
        gh = gy2 - gy1 + 1.0
        iw = jnp.maximum(jnp.minimum(ax2, gx2) - jnp.maximum(ax1, gx1) + 1.0, 0.0)  # (Bc,K,Np)
        ih = jnp.maximum(jnp.minimum(ay2, gy2) - jnp.maximum(ay1, gy1) + 1.0, 0.0)
        inter = iw * ih
        denom = aw * ah + gw * gh - inter
        # EUP approx reciprocal instead of a VALU divide (~1e-4 rel err; the
        # overlaps==gt_max equality below is unaffected since both sides use it).
        iou = inter * pl.reciprocal(denom, approx=True)
        a_zero = (aw == 1.0) & (ah == 1.0)   # (Bc, 1, Np)
        g_zero = (gw == 1.0) & (gh == 1.0)   # (Bc, K, 1)
        return iou, a_zero, g_zero

    iou_s, az_s, gz_s = iou_part(0)   # subject boxes
    iou_o, az_o, gz_o = iou_part(4)   # object boxes
    az = az_s & az_o                  # zero roi pair rows     (Bc, 1, Np)
    gz = gz_s & gz_o                  # padded gt pair rows    (Bc, K, 1)
    # Single nested select over the big (Bc, K, Np) slab; zero-roi (-1) wins over gt-pad (0).
    overlaps = jnp.where(az, -1.0, jnp.where(gz, 0.0, iou_s * iou_o))      # (Bc, K, Np)

    max_ov = jnp.max(overlaps, axis=1, keepdims=True)                       # (Bc, 1, Np)
    gt_max = jnp.max(overlaps, axis=2, keepdims=True)                       # (Bc, K, 1)
    gt_max = jnp.where(gt_max == 0.0, 1e-5, gt_max)
    keep = jnp.sum((overlaps == gt_max).astype(f32), axis=1, keepdims=True)  # (Bc, 1, Np)

    labels = jnp.full((Bc, 1, Np), -1.0, f32)
    # not CLOBBER_POSITIVES -> negatives first
    labels = jnp.where(max_ov < CFG_RELPN_NEGATIVE_OVERLAP, 0.0, labels)
    labels = jnp.where(keep > 0.0, 1.0, labels)
    labels = jnp.where(max_ov >= CFG_RELPN_POSITIVE_OVERLAP, 1.0, labels)

    # Padded lanes (>= n_real) carry no label and are excluded from everything below.
    lane = jax.lax.broadcasted_iota(jnp.int32, (Bc, 1, Np), 2)
    lane_f = lane.astype(f32)
    valid = lane < n_real
    labels = jnp.where(valid, labels, -1.0)

    fg = labels == 1.0
    bg = labels == 0.0
    fg_f = fg.astype(f32)
    bg_f = bg.astype(f32)
    idx_fg = (scores > 0.8) & (lane < 300) & valid

    # ---------- statistics: six per-sample sums with ONE cross-lane reduce ----------
    zero_row = jnp.zeros_like(fg_f)
    stat_slab = jnp.concatenate(
        [fg_f,                                    # 0: sum_fg
         bg_f,                                    # 1: sum_bg
         (fg & (scores >= 0.5)).astype(f32),      # 2: num_rights_fg
         (bg & (scores < 0.5)).astype(f32),       # 3: num_rights_bg
         (idx_fg & fg).astype(f32),               # 4: num_fg_pre_correct
         idx_fg.astype(f32),                      # 5: all_fg_pre contribution
         zero_row, zero_row], axis=1)             # (Bc, 8, Np)
    stat_sums = jnp.sum(stat_slab, axis=2, keepdims=True)                   # (Bc, 8, 1)
    stats_ref[...] = jnp.broadcast_to(stat_sums, stats_ref.shape).astype(stats_ref.dtype)

    sum_fg = stat_sums[:, 0:1, :]                                           # (Bc, 1, 1)

    # ---------- fg / bg subsampling (deterministic keep-first) ----------
    big = float(Np)

    # fg chain: peel the NUM_FG_CAP smallest-index fg entries; what remains is surplus.
    fg_mask = fg
    for _ in range(NUM_FG_CAP):
        t_fg = jnp.min(jnp.where(fg_mask, lane_f, big), axis=2, keepdims=True)  # (Bc,1,1)
        fg_mask = fg_mask & (lane_f > t_fg)
    surplus_fg = fg_mask

    # bg chain: peel ALL BATCHSIZE candidate thresholds unconditionally (independent of
    # the fg chain), then select the num_bg-th smallest bg index as the keep threshold.
    bg_thresholds = []
    bg_mask = bg
    for _ in range(CFG_RELPN_BATCHSIZE):
        t_bg = jnp.min(jnp.where(bg_mask, lane_f, big), axis=2, keepdims=True)
        bg_thresholds.append(t_bg)
        bg_mask = bg_mask & (lane_f > t_bg)

    fg_after = jnp.minimum(sum_fg, float(NUM_FG_CAP))                        # (Bc, 1, 1)
    num_bg = float(CFG_RELPN_BATCHSIZE) - fg_after                           # in [4, 8]
    bg_thr = bg_thresholds[0]
    for j in range(1, CFG_RELPN_BATCHSIZE):
        bg_thr = jnp.where(num_bg >= float(j + 1), bg_thresholds[j], bg_thr)
    surplus_bg = bg & (lane_f > bg_thr)

    labels = jnp.where(surplus_fg | surplus_bg, -1.0, labels)
    labels_ref[...] = labels.astype(labels_ref.dtype)     # single dense lane-full store


# ------------------------------- glue (JAX) ----------------------------------
def _build_gt_box_pairs(gt_boxes_i, gt_rel_i):
    """Compact valid relations to the front and gather subject/object gt boxes."""
    R = gt_rel_i.shape[0]
    K = CFG_MAX_ROI_PAIR_NUMBER
    valid = gt_rel_i[:, -1] > 0
    order = jnp.argsort(jnp.logical_not(valid).astype(jnp.int32), stable=True)
    rel_sorted = gt_rel_i[order]
    n_rel = jnp.sum(valid.astype(jnp.int32))
    sub_idx = rel_sorted[:, 0].astype(jnp.int32)
    obj_idx = rel_sorted[:, 1].astype(jnp.int32)
    pairs = jnp.concatenate([gt_boxes_i[sub_idx, :4], gt_boxes_i[obj_idx, :4]], axis=1)
    row_ok = (jnp.arange(R) < n_rel)[:, None]
    pairs = jnp.where(row_ok, pairs, 0.0).astype(jnp.float32)       # (R, 8)
    if R >= K:
        return pairs[:K]
    return jnp.concatenate([pairs, jnp.zeros((K - R, 8), jnp.float32)], axis=0)


def _pick_block_batch(B, N_pad, K):
    """Block-batch size from an ~8 MiB live-VMEM budget per grid step."""
    bytes_per_sample = (
        2 * (8 + 1) * N_pad * 4            # double-buffered roi + score input slabs
        + 2 * (1 * N_pad + 8 * 128) * 4    # double-buffered label + stats output slabs
        + 2 * K * 8 * 4                    # double-buffered gt pair slab
        + 6 * K * N_pad * 4                # live (K, N) f32 intermediates in the IoU math
    )
    budget = 8 * 1024 * 1024               # safe on v7x (64 MiB physical VMEM) and below
    bc = max(1, budget // max(bytes_per_sample, 1))
    bc = min(bc, B)
    if B >= 4:
        # keep >= 4 grid steps so both v7x TensorCores get balanced work; on 1-TC chips
        # the extra steps cost ~0.35 us each, negligible vs bounded-VMEM benefit.
        bc = min(bc, -(-B // 4))
    return int(bc)


def anchor_target_forward(roi_pairs, relpn_cls_score, gt_boxes, gt_relation,
                          im_info, num_gt_boxes):
    del im_info, num_gt_boxes  # unused by the forward path (as in the reference)
    B, N = relpn_cls_score.shape[0], relpn_cls_score.shape[1]
    K = CFG_MAX_ROI_PAIR_NUMBER

    # Lane-dense layout: the pair axis N sits on the 128-lane axis everywhere, padded to
    # a lane multiple so all loads/stores are full unmasked 128-lane accesses.
    # (allow_input_fusion lets XLA fuse this relayout into the pallas_call operands;
    #  ideally the producer would emit (B, 9, N) / (B, 1, N) directly.)
    N_pad = max(128, -(-N // 128) * 128)
    roi_boxes = jnp.transpose(roi_pairs[:, :, 1:].astype(jnp.float32), (0, 2, 1))   # (B, 8, N)
    scores = jnp.transpose(relpn_cls_score.astype(jnp.float32), (0, 2, 1))          # (B, 1, N)
    gt_box_pairs = jax.vmap(_build_gt_box_pairs)(gt_boxes.astype(jnp.float32),
                                                 gt_relation)                       # (B, K, 8)
    if N_pad != N:
        roi_boxes = jnp.pad(roi_boxes, ((0, 0), (0, 0), (0, N_pad - N)))
        scores = jnp.pad(scores, ((0, 0), (0, 0), (0, N_pad - N)))

    # Batch tiling from a VMEM budget; grid marked "parallel".
    Bc = _pick_block_batch(B, N_pad, K)
    num_steps = -(-B // Bc)
    B_pad = num_steps * Bc
    if B_pad != B:
        pad = B_pad - B
        roi_boxes = jnp.pad(roi_boxes, ((0, pad), (0, 0), (0, 0)))
        gt_box_pairs = jnp.pad(gt_box_pairs, ((0, pad), (0, 0), (0, 0)))
        scores = jnp.pad(scores, ((0, pad), (0, 0), (0, 0)))

    labels_out, stats_out = pl.pallas_call(
        functools.partial(_anchor_target_kernel, n_real=N),
        out_shape=(jax.ShapeDtypeStruct((B_pad, 1, N_pad), jnp.float32),
                   jax.ShapeDtypeStruct((B_pad, 8, 128), jnp.float32)),
        grid_spec=pltpu.PrefetchScalarGridSpec(
            num_scalar_prefetch=0,
            grid=(num_steps,),
            in_specs=[
                pl.BlockSpec((Bc, 8, N_pad), lambda b: (b, 0, 0)),
                pl.BlockSpec((Bc, K, 8), lambda b: (b, 0, 0)),
                pl.BlockSpec((Bc, 1, N_pad), lambda b: (b, 0, 0)),
            ],
            out_specs=[
                pl.BlockSpec((Bc, 1, N_pad), lambda b: (b, 0, 0)),
                pl.BlockSpec((Bc, 8, 128), lambda b: (b, 0, 0)),
            ],
        ),
        compiler_params=pltpu.CompilerParams(
            dimension_semantics=("parallel",),
            vmem_limit_bytes=32 * 1024 * 1024,
            allow_input_fusion=[True, True, True],
        ),
    )(roi_boxes, gt_box_pairs, scores)

    labels = labels_out[:B, 0, :N]                                   # (B, N) in {-1,0,1}
    stats = stats_out[:B, :, 0]                                      # (B, 8) per-sample stats

    all_sum_fg = jnp.sum(stats[:, 0])
    all_sum_bg = jnp.sum(stats[:, 1])
    num_rights_fg = jnp.sum(stats[:, 2])
    num_rights_bg = jnp.sum(stats[:, 3])
    num_fg_pre_correct = jnp.sum(stats[:, 4])
    all_fg_pre = 1e-5 + jnp.sum(stats[:, 5])

    relpn_recall_fg = num_rights_fg / all_sum_fg   # reference divides without epsilon
    relpn_recall_bg = num_rights_bg / all_sum_bg
    relpn_acc = num_fg_pre_correct / all_fg_pre
    return labels, (relpn_recall_fg, relpn_recall_bg, relpn_acc)


# --------------------------------- demo --------------------------------------
if __name__ == "__main__":
    key = jax.random.PRNGKey(0)
    B, N, G, R = 2, 16, 8, 6

    k1, k2, k3, k4, k5, k6, k7 = jax.random.split(key, 7)

    # gt boxes: (B, G, 5)
    xy1 = jax.random.uniform(k1, (B, G, 2), minval=0.0, maxval=60.0)
    wh = jax.random.uniform(k2, (B, G, 2), minval=8.0, maxval=40.0)
    cls = jax.random.randint(k3, (B, G, 1), 1, 6).astype(jnp.float32)
    gt_boxes = jnp.concatenate([xy1, xy1 + wh, cls], axis=-1).astype(jnp.float32)

    # gt relations: (B, R, 3) int32 [subject_idx, object_idx, predicate]
    sub = jax.random.randint(k4, (B, R, 1), 0, G)
    obj = jax.random.randint(k5, (B, R, 1), 0, G)
    pred_rand = jax.random.randint(k6, (B, R, 1), 0, 2)
    force_valid = (jnp.arange(R)[None, :, None] < 3).astype(jnp.int32)
    pred = jnp.maximum(pred_rand, force_valid)
    gt_relation = jnp.concatenate([sub, obj, pred], axis=-1).astype(jnp.int32)

    # roi pairs: (B, N, 9) — first 4 rois match gt pairs (positives), rest random
    gt_pairs_full = jax.vmap(_build_gt_box_pairs)(gt_boxes, gt_relation)  # (B, K, 8)
    rxy1 = jax.random.uniform(k7, (B, N, 2), minval=0.0, maxval=200.0)
    rwh = jax.random.uniform(k1, (B, N, 2), minval=4.0, maxval=30.0)
    rand_sub = jnp.concatenate([rxy1, rxy1 + rwh], axis=-1)
    rxy1b = jax.random.uniform(k2, (B, N, 2), minval=0.0, maxval=200.0)
    rwhb = jax.random.uniform(k3, (B, N, 2), minval=4.0, maxval=30.0)
    rand_obj = jnp.concatenate([rxy1b, rxy1b + rwhb], axis=-1)
    rand_pairs = jnp.concatenate([rand_sub, rand_obj], axis=-1)           # (B, N, 8)
    first_mask = (jnp.arange(N)[None, :, None] < 4)
    roi_boxes = jnp.where(first_mask, gt_pairs_full[:, :N, :], rand_pairs)
    batch_col = jnp.broadcast_to(jnp.arange(B, dtype=jnp.float32)[:, None, None], (B, N, 1))
    roi_pairs = jnp.concatenate([batch_col, roi_boxes], axis=-1).astype(jnp.float32)

    relpn_cls_score = jax.random.uniform(k5, (B, N, 1), dtype=jnp.float32)
    im_info = jnp.tile(jnp.array([[600.0, 800.0, 1.0]], jnp.float32), (B, 1))
    num_gt_boxes = jnp.full((B,), G, dtype=jnp.int32)

    labels, (recall_fg, recall_bg, acc) = anchor_target_forward(
        roi_pairs, relpn_cls_score, gt_boxes, gt_relation, im_info, num_gt_boxes)

    jax.block_until_ready((labels, recall_fg, recall_bg, acc))
    print("KERNEL_OK")
</pallas_src>

<mosaic_0001>
module attributes {stable_mosaic.version = 11 : i64} {
  func.func @_anchor_target_kernel(%arg0: i32, %arg1: memref<2x8x128xf32, #tpu.memory_space<vmem>>, %arg2: memref<2x16x8xf32, #tpu.memory_space<vmem>>, %arg3: memref<2x1x128xf32, #tpu.memory_space<vmem>>, %arg4: memref<2x1x128xf32, #tpu.memory_space<vmem>>, %arg5: memref<2x8x128xf32, #tpu.memory_space<vmem>>) attributes {dimension_semantics = [#tpu.dimension_semantics<parallel>], iteration_bounds = array<i64: 1>, scalar_prefetch = 0 : i64, scratch_operands = 0 : i64, tpu.core_type = #tpu.core_type<tc>, window_params = [{transform_indices = @transform_0, window_bounds = array<i64: 2, 8, 128>}, {transform_indices = @transform_1, window_bounds = array<i64: 2, 16, 8>}, {transform_indices = @transform_2, window_bounds = array<i64: 2, 1, 128>}, {transform_indices = @transform_3, window_bounds = array<i64: 2, 1, 128>}, {transform_indices = @transform_4, window_bounds = array<i64: 2, 8, 128>}]} {
    %c0 = arith.constant 0 : index
    %c0_0 = arith.constant 0 : index
    %c0_1 = arith.constant 0 : index
    %0 = vector.load %arg1[%c0, %c0_0, %c0_1] : memref<2x8x128xf32, #tpu.memory_space<vmem>>, vector<2x8x128xf32>
    %c0_2 = arith.constant 0 : index
    %c0_3 = arith.constant 0 : index
    %c0_4 = arith.constant 0 : index
    %1 = vector.load %arg2[%c0_2, %c0_3, %c0_4] : memref<2x16x8xf32, #tpu.memory_space<vmem>>, vector<2x16x8xf32>
    %c0_5 = arith.constant 0 : index
    %c0_6 = arith.constant 0 : index
    %c0_7 = arith.constant 0 : index
    %2 = vector.load %arg3[%c0_5, %c0_6, %c0_7] : memref<2x1x128xf32, #tpu.memory_space<vmem>>, vector<2x1x128xf32>
    %3 = vector.extract_strided_slice %0 {offsets = [0, 0, 0], sizes = [2, 1, 128], strides = [1, 1, 1]} : vector<2x8x128xf32> to vector<2x1x128xf32>
    %4 = vector.extract_strided_slice %0 {offsets = [0, 1, 0], sizes = [2, 1, 128], strides = [1, 1, 1]} : vector<2x8x128xf32> to vector<2x1x128xf32>
    %5 = vector.extract_strided_slice %0 {offsets = [0, 2, 0], sizes = [2, 1, 128], strides = [1, 1, 1]} : vector<2x8x128xf32> to vector<2x1x128xf32>
    %6 = vector.extract_strided_slice %0 {offsets = [0, 3, 0], sizes = [2, 1, 128], strides = [1, 1, 1]} : vector<2x8x128xf32> to vector<2x1x128xf32>
    %7 = vector.extract_strided_slice %1 {offsets = [0, 0, 0], sizes = [2, 16, 1], strides = [1, 1, 1]} : vector<2x16x8xf32> to vector<2x16x1xf32>
    %8 = vector.extract_strided_slice %1 {offsets = [0, 0, 1], sizes = [2, 16, 1], strides = [1, 1, 1]} : vector<2x16x8xf32> to vector<2x16x1xf32>
    %9 = vector.extract_strided_slice %1 {offsets = [0, 0, 2], sizes = [2, 16, 1], strides = [1, 1, 1]} : vector<2x16x8xf32> to vector<2x16x1xf32>
    %10 = vector.extract_strided_slice %1 {offsets = [0, 0, 3], sizes = [2, 16, 1], strides = [1, 1, 1]} : vector<2x16x8xf32> to vector<2x16x1xf32>
    %11 = arith.subf %5, %3 : vector<2x1x128xf32>
    %cst = arith.constant 1.000000e+00 : f32
    %12 = vector.broadcast %cst : f32 to vector<2x1x128xf32>
    %13 = arith.addf %11, %12 : vector<2x1x128xf32>
    %14 = arith.subf %6, %4 : vector<2x1x128xf32>
    %cst_8 = arith.constant 1.000000e+00 : f32
    %15 = vector.broadcast %cst_8 : f32 to vector<2x1x128xf32>
    %16 = arith.addf %14, %15 : vector<2x1x128xf32>
    %17 = arith.subf %9, %7 : vector<2x16x1xf32>
    %cst_9 = arith.constant 1.000000e+00 : f32
    %18 = vector.broadcast %cst_9 : f32 to vector<2x16x1xf32>
    %19 = arith.addf %17, %18 : vector<2x16x1xf32>
    %20 = arith.subf %10, %8 : vector<2x16x1xf32>
    %cst_10 = arith.constant 1.000000e+00 : f32
    %21 = vector.broadcast %cst_10 : f32 to vector<2x16x1xf32>
    %22 = arith.addf %20, %21 : vector<2x16x1xf32>
    %23 = vector.broadcast %5 : vector<2x1x128xf32> to vector<2x16x128xf32>
    %24 = vector.broadcast %9 : vector<2x16x1xf32> to vector<2x16x128xf32>
    %25 = arith.minimumf %23, %24 : vector<2x16x128xf32>
    %26 = vector.broadcast %3 : vector<2x1x128xf32> to vector<2x16x128xf32>
    %27 = vector.broadcast %7 : vector<2x16x1xf32> to vector<2x16x128xf32>
    %28 = arith.maximumf %26, %27 : vector<2x16x128xf32>
    %29 = arith.subf %25, %28 : vector<2x16x128xf32>
    %cst_11 = arith.constant 1.000000e+00 : f32
    %30 = vector.broadcast %cst_11 : f32 to vector<2x16x128xf32>
    %31 = arith.addf %29, %30 : vector<2x16x128xf32>
    %cst_12 = arith.constant 0.000000e+00 : f32
    %32 = vector.broadcast %cst_12 : f32 to vector<2x16x128xf32>
    %33 = arith.maximumf %31, %32 : vector<2x16x128xf32>
    %34 = vector.broadcast %6 : vector<2x1x128xf32> to vector<2x16x128xf32>
    %35 = vector.broadcast %10 : vector<2x16x1xf32> to vector<2x16x128xf32>
    %36 = arith.minimumf %34, %35 : vector<2x16x128xf32>
    %37 = vector.broadcast %4 : vector<2x1x128xf32> to vector<2x16x128xf32>
    %38 = vector.broadcast %8 : vector<2x16x1xf32> to vector<2x16x128xf32>
    %39 = arith.maximumf %37, %38 : vector<2x16x128xf32>
    %40 = arith.subf %36, %39 : vector<2x16x128xf32>
    %cst_13 = arith.constant 1.000000e+00 : f32
    %41 = vector.broadcast %cst_13 : f32 to vector<2x16x128xf32>
    %42 = arith.addf %40, %41 : vector<2x16x128xf32>
    %cst_14 = arith.constant 0.000000e+00 : f32
    %43 = vector.broadcast %cst_14 : f32 to vector<2x16x128xf32>
    %44 = arith.maximumf %42, %43 : vector<2x16x128xf32>
    %45 = arith.mulf %33, %44 : vector<2x16x128xf32>
    %46 = arith.mulf %13, %16 : vector<2x1x128xf32>
    %47 = arith.mulf %19, %22 : vector<2x16x1xf32>
    %48 = vector.broadcast %46 : vector<2x1x128xf32> to vector<2x16x128xf32>
    %49 = vector.broadcast %47 : vector<2x16x1xf32> to vector<2x16x128xf32>
    %50 = arith.addf %48, %49 : vector<2x16x128xf32>
    %51 = arith.subf %50, %45 : vector<2x16x128xf32>
    %52 = tpu.reciprocal %51 {approx = true} : vector<2x16x128xf32> -> vector<2x16x128xf32>
    %53 = arith.mulf %45, %52 : vector<2x16x128xf32>
    %cst_15 = arith.constant 1.000000e+00 : f32
    %54 = vector.broadcast %cst_15 : f32 to vector<2x1x128xf32>
    %55 = arith.cmpf oeq, %13, %54 : vector<2x1x128xf32>
    %cst_16 = arith.constant 1.000000e+00 : f32
    %56 = vector.broadcast %cst_16 : f32 to vector<2x1x128xf32>
    %57 = arith.cmpf oeq, %16, %56 : vector<2x1x128xf32>
    %58 = arith.andi %55, %57 : vector<2x1x128xi1>
    %cst_17 = arith.constant 1.000000e+00 : f32
    %59 = vector.broadcast %cst_17 : f32 to vector<2x16x1xf32>
    %60 = arith.cmpf oeq, %19, %59 : vector<2x16x1xf32>
    %cst_18 = arith.constant 1.000000e+00 : f32
    %61 = vector.broadcast %cst_18 : f32 to vector<2x16x1xf32>
    %62 = arith.cmpf oeq, %22, %61 : vector<2x16x1xf32>
    %63 = arith.andi %60, %62 : vector<2x16x1xi1>
    %64 = vector.extract_strided_slice %0 {offsets = [0, 4, 0], sizes = [2, 1, 128], strides = [1, 1, 1]} : vector<2x8x128xf32> to vector<2x1x128xf32>
    %65 = vector.extract_strided_slice %0 {offsets = [0, 5, 0], sizes = [2, 1, 128], strides = [1, 1, 1]} : vector<2x8x128xf32> to vector<2x1x128xf32>
    %66 = vector.extract_strided_slice %0 {offsets = [0, 6, 0], sizes = [2, 1, 128], strides = [1, 1, 1]} : vector<2x8x128xf32> to vector<2x1x128xf32>
    %67 = vector.extract_strided_slice %0 {offsets = [0, 7, 0], sizes = [2, 1, 128], strides = [1, 1, 1]} : vector<2x8x128xf32> to vector<2x1x128xf32>
    %68 = vector.extract_strided_slice %1 {offsets = [0, 0, 4], sizes = [2, 16, 1], strides = [1, 1, 1]} : vector<2x16x8xf32> to vector<2x16x1xf32>
    %69 = vector.extract_strided_slice %1 {offsets = [0, 0, 5], sizes = [2, 16, 1], strides = [1, 1, 1]} : vector<2x16x8xf32> to vector<2x16x1xf32>
    %70 = vector.extract_strided_slice %1 {offsets = [0, 0, 6], sizes = [2, 16, 1], strides = [1, 1, 1]} : vector<2x16x8xf32> to vector<2x16x1xf32>
    %71 = vector.extract_strided_slice %1 {offsets = [0, 0, 7], sizes = [2, 16, 1], strides = [1, 1, 1]} : vector<2x16x8xf32> to vector<2x16x1xf32>
    %72 = arith.subf %66, %64 : vector<2x1x128xf32>
    %cst_19 = arith.constant 1.000000e+00 : f32
    %73 = vector.broadcast %cst_19 : f32 to vector<2x1x128xf32>
    %74 = arith.addf %72, %73 : vector<2x1x128xf32>
    %75 = arith.subf %67, %65 : vector<2x1x128xf32>
    %cst_20 = arith.constant 1.000000e+00 : f32
    %76 = vector.broadcast %cst_20 : f32 to vector<2x1x128xf32>
    %77 = arith.addf %75, %76 : vector<2x1x128xf32>
    %78 = arith.subf %70, %68 : vector<2x16x1xf32>
    %cst_21 = arith.constant 1.000000e+00 : f32
    %79 = vector.broadcast %cst_21 : f32 to vector<2x16x1xf32>
    %80 = arith.addf %78, %79 : vector<2x16x1xf32>
    %81 = arith.subf %71, %69 : vector<2x16x1xf32>
    %cst_22 = arith.constant 1.000000e+00 : f32
    %82 = vector.broadcast %cst_22 : f32 to vector<2x16x1xf32>
    %83 = arith.addf %81, %82 : vector<2x16x1xf32>
    %84 = vector.broadcast %66 : vector<2x1x128xf32> to vector<2x16x128xf32>
    %85 = vector.broadcast %70 : vector<2x16x1xf32> to vector<2x16x128xf32>
    %86 = arith.minimumf %84, %85 : vector<2x16x128xf32>
    %87 = vector.broadcast %64 : vector<2x1x128xf32> to vector<2x16x128xf32>
    %88 = vector.broadcast %68 : vector<2x16x1xf32> to vector<2x16x128xf32>
    %89 = arith.maximumf %87, %88 : vector<2x16x128xf32>
    %90 = arith.subf %86, %89 : vector<2x16x128xf32>
    %cst_23 = arith.constant 1.000000e+00 : f32
    %91 = vector.broadcast %cst_23 : f32 to vector<2x16x128xf32>
    %92 = arith.addf %90, %91 : vector<2x16x128xf32>
    %cst_24 = arith.constant 0.000000e+00 : f32
    %93 = vector.broadcast %cst_24 : f32 to vector<2x16x128xf32>
    %94 = arith.maximumf %92, %93 : vector<2x16x128xf32>
    %95 = vector.broadcast %67 : vector<2x1x128xf32> to vector<2x16x128xf32>
    %96 = vector.broadcast %71 : vector<2x16x1xf32> to vector<2x16x128xf32>
    %97 = arith.minimumf %95, %96 : vector<2x16x128xf32>
    %98 = vector.broadcast %65 : vector<2x1x128xf32> to vector<2x16x128xf32>
    %99 = vector.broadcast %69 : vector<2x16x1xf32> to vector<2x16x128xf32>
    %100 = arith.maximumf %98, %99 : vector<2x16x128xf32>
    %101 = arith.subf %97, %100 : vector<2x16x128xf32>
    %cst_25 = arith.constant 1.000000e+00 : f32
    %102 = vector.broadcast %cst_25 : f32 to vector<2x16x128xf32>
    %103 = arith.addf %101, %102 : vector<2x16x128xf32>
    %cst_26 = arith.constant 0.000000e+00 : f32
    %104 = vector.broadcast %cst_26 : f32 to vector<2x16x128xf32>
    %105 = arith.maximumf %103, %104 : vector<2x16x128xf32>
    %106 = arith.mulf %94, %105 : vector<2x16x128xf32>
    %107 = arith.mulf %74, %77 : vector<2x1x128xf32>
    %108 = arith.mulf %80, %83 : vector<2x16x1xf32>
    %109 = vector.broadcast %107 : vector<2x1x128xf32> to vector<2x16x128xf32>
    %110 = vector.broadcast %108 : vector<2x16x1xf32> to vector<2x16x128xf32>
    %111 = arith.addf %109, %110 : vector<2x16x128xf32>
    %112 = arith.subf %111, %106 : vector<2x16x128xf32>
    %113 = tpu.reciprocal %112 {approx = true} : vector<2x16x128xf32> -> vector<2x16x128xf32>
    %114 = arith.mulf %106, %113 : vector<2x16x128xf32>
    %cst_27 = arith.constant 1.000000e+00 : f32
    %115 = vector.broadcast %cst_27 : f32 to vector<2x1x128xf32>
    %116 = arith.cmpf oeq, %74, %115 : vector<2x1x128xf32>
    %cst_28 = arith.constant 1.000000e+00 : f32
    %117 = vector.broadcast %cst_28 : f32 to vector<2x1x128xf32>
    %118 = arith.cmpf oeq, %77, %117 : vector<2x1x128xf32>
    %119 = arith.andi %116, %118 : vector<2x1x128xi1>
    %cst_29 = arith.constant 1.000000e+00 : f32
    %120 = vector.broadcast %cst_29 : f32 to vector<2x16x1xf32>
    %121 = arith.cmpf oeq, %80, %120 : vector<2x16x1xf32>
    %cst_30 = arith.constant 1.000000e+00 : f32
    %122 = vector.broadcast %cst_30 : f32 to vector<2x16x1xf32>
    %123 = arith.cmpf oeq, %83, %122 : vector<2x16x1xf32>
    %124 = arith.andi %121, %123 : vector<2x16x1xi1>
    %125 = arith.andi %58, %119 : vector<2x1x128xi1>
    %126 = arith.andi %63, %124 : vector<2x16x1xi1>
    %127 = arith.mulf %53, %114 : vector<2x16x128xf32>
    %cst_31 = arith.constant 0.000000e+00 : f32
    %128 = vector.shape_cast %126 : vector<2x16x1xi1> to vector<2x16x1xi1>
    %129 = vector.broadcast %128 : vector<2x16x1xi1> to vector<2x16x128xi1>
    %130 = vector.broadcast %cst_31 : f32 to vector<2x16x128xf32>
    %131 = arith.select %129, %130, %127 : vector<2x16x128xi1>, vector<2x16x128xf32>
    %cst_32 = arith.constant -1.000000e+00 : f32
    %132 = vector.shape_cast %125 : vector<2x1x128xi1> to vector<2x1x128xi1>
    %133 = vector.broadcast %132 : vector<2x1x128xi1> to vector<2x16x128xi1>
    %134 = vector.broadcast %cst_32 : f32 to vector<2x16x128xf32>
    %135 = arith.select %133, %134, %131 : vector<2x16x128xi1>, vector<2x16x128xf32>
    %cst_33 = arith.constant dense<0xFF800000> : vector<2x128xf32>
    %136 = vector.multi_reduction <maximumf>, %135, %cst_33 [1] : vector<2x16x128xf32> to vector<2x128xf32>
    %137 = vector.shape_cast %136 : vector<2x128xf32> to vector<2x1x128xf32>
    %cst_34 = arith.constant dense<0xFF800000> : vector<2x16xf32>
    %138 = vector.multi_reduction <maximumf>, %135, %cst_34 [2] : vector<2x16x128xf32> to vector<2x16xf32>
    %139 = vector.shape_cast %138 : vector<2x16xf32> to vector<2x16x1xf32>
    %cst_35 = arith.constant 0.000000e+00 : f32
    %140 = vector.broadcast %cst_35 : f32 to vector<2x16x1xf32>
    %141 = arith.cmpf oeq, %139, %140 : vector<2x16x1xf32>
    %cst_36 = arith.constant 9.99999974E-6 : f32
    %142 = vector.broadcast %cst_36 : f32 to vector<2x16x1xf32>
    %143 = arith.select %141, %142, %139 : vector<2x16x1xi1>, vector<2x16x1xf32>
    %144 = vector.broadcast %143 : vector<2x16x1xf32> to vector<2x16x128xf32>
    %145 = arith.cmpf oeq, %135, %144 : vector<2x16x128xf32>
    %146 = arith.extui %145 : vector<2x16x128xi1> to vector<2x16x128xi32>
    %147 = arith.sitofp %146 : vector<2x16x128xi32> to vector<2x16x128xf32>
    %cst_37 = arith.constant dense<0.000000e+00> : vector<2x128xf32>
    %148 = vector.multi_reduction <add>, %147, %cst_37 [1] : vector<2x16x128xf32> to vector<2x128xf32>
    %149 = vector.shape_cast %148 : vector<2x128xf32> to vector<2x1x128xf32>
    %cst_38 = arith.constant -1.000000e+00 : f32
    %150 = vector.broadcast %cst_38 : f32 to vector<2x1x128xf32>
    %cst_39 = arith.constant 3.000000e-01 : f32
    %151 = vector.broadcast %cst_39 : f32 to vector<2x1x128xf32>
    %152 = arith.cmpf olt, %137, %151 : vector<2x1x128xf32>
    %cst_40 = arith.constant 0.000000e+00 : f32
    %153 = vector.broadcast %cst_40 : f32 to vector<2x1x128xf32>
    %154 = arith.select %152, %153, %150 : vector<2x1x128xi1>, vector<2x1x128xf32>
    %cst_41 = arith.constant 0.000000e+00 : f32
    %155 = vector.broadcast %cst_41 : f32 to vector<2x1x128xf32>
    %156 = arith.cmpf ogt, %149, %155 : vector<2x1x128xf32>
    %cst_42 = arith.constant 1.000000e+00 : f32
    %157 = vector.broadcast %cst_42 : f32 to vector<2x1x128xf32>
    %158 = arith.select %156, %157, %154 : vector<2x1x128xi1>, vector<2x1x128xf32>
    %cst_43 = arith.constant 0.699999988 : f32
    %159 = vector.broadcast %cst_43 : f32 to vector<2x1x128xf32>
    %160 = arith.cmpf oge, %137, %159 : vector<2x1x128xf32>
    %cst_44 = arith.constant 1.000000e+00 : f32
    %161 = vector.broadcast %cst_44 : f32 to vector<2x1x128xf32>
    %162 = arith.select %160, %161, %158 : vector<2x1x128xi1>, vector<2x1x128xf32>
    %163 = tpu.iota {dimensions = array<i32: 2>} : vector<2x1x128xi32>
    %164 = arith.sitofp %163 : vector<2x1x128xi32> to vector<2x1x128xf32>
    %c16_i32 = arith.constant 16 : i32
    %165 = vector.broadcast %c16_i32 : i32 to vector<2x1x128xi32>
    %166 = arith.cmpi slt, %163, %165 : vector<2x1x128xi32>
    %cst_45 = arith.constant -1.000000e+00 : f32
    %167 = vector.broadcast %cst_45 : f32 to vector<2x1x128xf32>
    %168 = arith.select %166, %162, %167 : vector<2x1x128xi1>, vector<2x1x128xf32>
    %cst_46 = arith.constant 1.000000e+00 : f32
    %169 = vector.broadcast %cst_46 : f32 to vector<2x1x128xf32>
    %170 = arith.cmpf oeq, %168, %169 : vector<2x1x128xf32>
    %cst_47 = arith.constant 0.000000e+00 : f32
    %171 = vector.broadcast %cst_47 : f32 to vector<2x1x128xf32>
    %172 = arith.cmpf oeq, %168, %171 : vector<2x1x128xf32>
    %173 = arith.extui %170 : vector<2x1x128xi1> to vector<2x1x128xi32>
    %174 = arith.sitofp %173 : vector<2x1x128xi32> to vector<2x1x128xf32>
    %175 = arith.extui %172 : vector<2x1x128xi1> to vector<2x1x128xi32>
    %176 = arith.sitofp %175 : vector<2x1x128xi32> to vector<2x1x128xf32>
    %cst_48 = arith.constant 8.000000e-01 : f32
    %177 = vector.broadcast %cst_48 : f32 to vector<2x1x128xf32>
    %178 = arith.cmpf ogt, %2, %177 : vector<2x1x128xf32>
    %c300_i32 = arith.constant 300 : i32
    %179 = vector.broadcast %c300_i32 : i32 to vector<2x1x128xi32>
    %180 = arith.cmpi slt, %163, %179 : vector<2x1x128xi32>
    %181 = arith.andi %178, %180 : vector<2x1x128xi1>
    %182 = arith.andi %181, %166 : vector<2x1x128xi1>
    %cst_49 = arith.constant 0.000000e+00 : f32
    %183 = vector.broadcast %cst_49 : f32 to vector<2x1x128xf32>
    %cst_50 = arith.constant 5.000000e-01 : f32
    %184 = vector.broadcast %cst_50 : f32 to vector<2x1x128xf32>
    %185 = arith.cmpf oge, %2, %184 : vector<2x1x128xf32>
    %186 = arith.andi %170, %185 : vector<2x1x128xi1>
    %187 = arith.extui %186 : vector<2x1x128xi1> to vector<2x1x128xi32>
    %188 = arith.sitofp %187 : vector<2x1x128xi32> to vector<2x1x128xf32>
    %cst_51 = arith.constant 5.000000e-01 : f32
    %189 = vector.broadcast %cst_51 : f32 to vector<2x1x128xf32>
    %190 = arith.cmpf olt, %2, %189 : vector<2x1x128xf32>
    %191 = arith.andi %172, %190 : vector<2x1x128xi1>
    %192 = arith.extui %191 : vector<2x1x128xi1> to vector<2x1x128xi32>
    %193 = arith.sitofp %192 : vector<2x1x128xi32> to vector<2x1x128xf32>
    %194 = arith.andi %182, %170 : vector<2x1x128xi1>
    %195 = arith.extui %194 : vector<2x1x128xi1> to vector<2x1x128xi32>
    %196 = arith.sitofp %195 : vector<2x1x128xi32> to vector<2x1x128xf32>
    %197 = arith.extui %182 : vector<2x1x128xi1> to vector<2x1x128xi32>
    %198 = arith.sitofp %197 : vector<2x1x128xi32> to vector<2x1x128xf32>
    %199 = tpu.concatenate %174, %176, %188, %193, %196, %198, %183, %183 in 1 : vector<2x1x128xf32>, vector<2x1x128xf32>, vector<2x1x128xf32>, vector<2x1x128xf32>, vector<2x1x128xf32>, vector<2x1x128xf32>, vector<2x1x128xf32>, vector<2x1x128xf32> -> vector<2x8x128xf32>
    %cst_52 = arith.constant dense<0.000000e+00> : vector<2x8xf32>
    %200 = vector.multi_reduction <add>, %199, %cst_52 [2] : vector<2x8x128xf32> to vector<2x8xf32>
    %201 = vector.shape_cast %200 : vector<2x8xf32> to vector<2x8x1xf32>
    %202 = vector.shape_cast %201 : vector<2x8x1xf32> to vector<2x8x1xf32>
    %203 = vector.broadcast %202 : vector<2x8x1xf32> to vector<2x8x128xf32>
    %c0_53 = arith.constant 0 : index
    %c0_54 = arith.constant 0 : index
    %c0_55 = arith.constant 0 : index
    %204 = vector.load %arg5[%c0_53, %c0_54, %c0_55] : memref<2x8x128xf32, #tpu.memory_space<vmem>>, vector<2x8x128xf32>
    tpu.vector_store %arg5[%c0_53, %c0_54, %c0_55], %203 {strides = array<i32>} : memref<2x8x128xf32, #tpu.memory_space<vmem>>, vector<2x8x128xf32>,
    %205 = vector.extract_strided_slice %201 {offsets = [0, 0, 0], sizes = [2, 1, 1], strides = [1, 1, 1]} : vector<2x8x1xf32> to vector<2x1x1xf32>
    %cst_56 = arith.constant 1.280000e+02 : f32
    %206 = vector.broadcast %cst_56 : f32 to vector<2x1x128xf32>
    %207 = arith.select %170, %164, %206 : vector<2x1x128xi1>, vector<2x1x128xf32>
    %cst_57 = arith.constant dense<0x7F800000> : vector<2x1xf32>
    %208 = vector.multi_reduction <minimumf>, %207, %cst_57 [2] : vector<2x1x128xf32> to vector<2x1xf32>
    %209 = vector.shape_cast %208 : vector<2x1xf32> to vector<2x1x1xf32>
    %210 = vector.broadcast %209 : vector<2x1x1xf32> to vector<2x1x128xf32>
    %211 = arith.cmpf ogt, %164, %210 : vector<2x1x128xf32>
    %212 = arith.andi %170, %211 : vector<2x1x128xi1>
    %cst_58 = arith.constant 1.280000e+02 : f32
    %213 = vector.broadcast %cst_58 : f32 to vector<2x1x128xf32>
    %214 = arith.select %212, %164, %213 : vector<2x1x128xi1>, vector<2x1x128xf32>
    %cst_59 = arith.constant dense<0x7F800000> : vector<2x1xf32>
    %215 = vector.multi_reduction <minimumf>, %214, %cst_59 [2] : vector<2x1x128xf32> to vector<2x1xf32>
    %216 = vector.shape_cast %215 : vector<2x1xf32> to vector<2x1x1xf32>
    %217 = vector.broadcast %216 : vector<2x1x1xf32> to vector<2x1x128xf32>
    %218 = arith.cmpf ogt, %164, %217 : vector<2x1x128xf32>
    %219 = arith.andi %212, %218 : vector<2x1x128xi1>
    %cst_60 = arith.constant 1.280000e+02 : f32
    %220 = vector.broadcast %cst_60 : f32 to vector<2x1x128xf32>
    %221 = arith.select %219, %164, %220 : vector<2x1x128xi1>, vector<2x1x128xf32>
    %cst_61 = arith.constant dense<0x7F800000> : vector<2x1xf32>
    %222 = vector.multi_reduction <minimumf>, %221, %cst_61 [2] : vector<2x1x128xf32> to vector<2x1xf32>
    %223 = vector.shape_cast %222 : vector<2x1xf32> to vector<2x1x1xf32>
    %224 = vector.broadcast %223 : vector<2x1x1xf32> to vector<2x1x128xf32>
    %225 = arith.cmpf ogt, %164, %224 : vector<2x1x128xf32>
    %226 = arith.andi %219, %225 : vector<2x1x128xi1>
    %cst_62 = arith.constant 1.280000e+02 : f32
    %227 = vector.broadcast %cst_62 : f32 to vector<2x1x128xf32>
    %228 = arith.select %226, %164, %227 : vector<2x1x128xi1>, vector<2x1x128xf32>
    %cst_63 = arith.constant dense<0x7F800000> : vector<2x1xf32>
    %229 = vector.multi_reduction <minimumf>, %228, %cst_63 [2] : vector<2x1x128xf32> to vector<2x1xf32>
    %230 = vector.shape_cast %229 : vector<2x1xf32> to vector<2x1x1xf32>
    %231 = vector.broadcast %230 : vector<2x1x1xf32> to vector<2x1x128xf32>
    %232 = arith.cmpf ogt, %164, %231 : vector<2x1x128xf32>
    %233 = arith.andi %226, %232 : vector<2x1x128xi1>
    %cst_64 = arith.constant 1.280000e+02 : f32
    %234 = vector.broadcast %cst_64 : f32 to vector<2x1x128xf32>
    %235 = arith.select %172, %164, %234 : vector<2x1x128xi1>, vector<2x1x128xf32>
    %cst_65 = arith.constant dense<0x7F800000> : vector<2x1xf32>
    %236 = vector.multi_reduction <minimumf>, %235, %cst_65 [2] : vector<2x1x128xf32> to vector<2x1xf32>
    %237 = vector.shape_cast %236 : vector<2x1xf32> to vector<2x1x1xf32>
    %238 = vector.broadcast %237 : vector<2x1x1xf32> to vector<2x1x128xf32>
    %239 = arith.cmpf ogt, %164, %238 : vector<2x1x128xf32>
    %240 = arith.andi %172, %239 : vector<2x1x128xi1>
    %cst_66 = arith.constant 1.280000e+02 : f32
    %241 = vector.broadcast %cst_66 : f32 to vector<2x1x128xf32>
    %242 = arith.select %240, %164, %241 : vector<2x1x128xi1>, vector<2x1x128xf32>
    %cst_67 = arith.constant dense<0x7F800000> : vector<2x1xf32>
    %243 = vector.multi_reduction <minimumf>, %242, %cst_67 [2] : vector<2x1x128xf32> to vector<2x1xf32>
    %244 = vector.shape_cast %243 : vector<2x1xf32> to vector<2x1x1xf32>
    %245 = vector.broadcast %244 : vector<2x1x1xf32> to vector<2x1x128xf32>
    %246 = arith.cmpf ogt, %164, %245 : vector<2x1x128xf32>
    %247 = arith.andi %240, %246 : vector<2x1x128xi1>
    %cst_68 = arith.constant 1.280000e+02 : f32
    %248 = vector.broadcast %cst_68 : f32 to vector<2x1x128xf32>
    %249 = arith.select %247, %164, %248 : vector<2x1x128xi1>, vector<2x1x128xf32>
    %cst_69 = arith.constant dense<0x7F800000> : vector<2x1xf32>
    %250 = vector.multi_reduction <minimumf>, %249, %cst_69 [2] : vector<2x1x128xf32> to vector<2x1xf32>
    %251 = vector.shape_cast %250 : vector<2x1xf32> to vector<2x1x1xf32>
    %252 = vector.broadcast %251 : vector<2x1x1xf32> to vector<2x1x128xf32>
    %253 = arith.cmpf ogt, %164, %252 : vector<2x1x128xf32>
    %254 = arith.andi %247, %253 : vector<2x1x128xi1>
    %cst_70 = arith.constant 1.280000e+02 : f32
    %255 = vector.broadcast %cst_70 : f32 to vector<2x1x128xf32>
    %256 = arith.select %254, %164, %255 : vector<2x1x128xi1>, vector<2x1x128xf32>
    %cst_71 = arith.constant dense<0x7F800000> : vector<2x1xf32>
    %257 = vector.multi_reduction <minimumf>, %256, %cst_71 [2] : vector<2x1x128xf32> to vector<2x1xf32>
    %258 = vector.shape_cast %257 : vector<2x1xf32> to vector<2x1x1xf32>
    %259 = vector.broadcast %258 : vector<2x1x1xf32> to vector<2x1x128xf32>
    %260 = arith.cmpf ogt, %164, %259 : vector<2x1x128xf32>
    %261 = arith.andi %254, %260 : vector<2x1x128xi1>
    %cst_72 = arith.constant 1.280000e+02 : f32
    %262 = vector.broadcast %cst_72 : f32 to vector<2x1x128xf32>
    %263 = arith.select %261, %164, %262 : vector<2x1x128xi1>, vector<2x1x128xf32>
    %cst_73 = arith.constant dense<0x7F800000> : vector<2x1xf32>
    %264 = vector.multi_reduction <minimumf>, %263, %cst_73 [2] : vector<2x1x128xf32> to vector<2x1xf32>
    %265 = vector.shape_cast %264 : vector<2x1xf32> to vector<2x1x1xf32>
    %266 = vector.broadcast %265 : vector<2x1x1xf32> to vector<2x1x128xf32>
    %267 = arith.cmpf ogt, %164, %266 : vector<2x1x128xf32>
    %268 = arith.andi %261, %267 : vector<2x1x128xi1>
    %cst_74 = arith.constant 1.280000e+02 : f32
    %269 = vector.broadcast %cst_74 : f32 to vector<2x1x128xf32>
    %270 = arith.select %268, %164, %269 : vector<2x1x128xi1>, vector<2x1x128xf32>
    %cst_75 = arith.constant dense<0x7F800000> : vector<2x1xf32>
    %271 = vector.multi_reduction <minimumf>, %270, %cst_75 [2] : vector<2x1x128xf32> to vector<2x1xf32>
    %272 = vector.shape_cast %271 : vector<2x1xf32> to vector<2x1x1xf32>
    %273 = vector.broadcast %272 : vector<2x1x1xf32> to vector<2x1x128xf32>
    %274 = arith.cmpf ogt, %164, %273 : vector<2x1x128xf32>
    %275 = arith.andi %268, %274 : vector<2x1x128xi1>
    %cst_76 = arith.constant 1.280000e+02 : f32
    %276 = vector.broadcast %cst_76 : f32 to vector<2x1x128xf32>
    %277 = arith.select %275, %164, %276 : vector<2x1x128xi1>, vector<2x1x128xf32>
    %cst_77 = arith.constant dense<0x7F800000> : vector<2x1xf32>
    %278 = vector.multi_reduction <minimumf>, %277, %cst_77 [2] : vector<2x1x128xf32> to vector<2x1xf32>
    %279 = vector.shape_cast %278 : vector<2x1xf32> to vector<2x1x1xf32>
    %280 = vector.broadcast %279 : vector<2x1x1xf32> to vector<2x1x128xf32>
    %281 = arith.cmpf ogt, %164, %280 : vector<2x1x128xf32>
    %282 = arith.andi %275, %281 : vector<2x1x128xi1>
    %cst_78 = arith.constant 1.280000e+02 : f32
    %283 = vector.broadcast %cst_78 : f32 to vector<2x1x128xf32>
    %284 = arith.select %282, %164, %283 : vector<2x1x128xi1>, vector<2x1x128xf32>
    %cst_79 = arith.constant dense<0x7F800000> : vector<2x1xf32>
    %285 = vector.multi_reduction <minimumf>, %284, %cst_79 [2] : vector<2x1x128xf32> to vector<2x1xf32>
    %286 = vector.shape_cast %285 : vector<2x1xf32> to vector<2x1x1xf32>
    %cst_80 = arith.constant 4.000000e+00 : f32
    %287 = vector.broadcast %cst_80 : f32 to vector<2x1x1xf32>
    %288 = arith.minimumf %205, %287 : vector<2x1x1xf32>
    %cst_81 = arith.constant 8.000000e+00 : f32
    %289 = vector.broadcast %cst_81 : f32 to vector<2x1x1xf32>
    %290 = arith.subf %289, %288 : vector<2x1x1xf32>
    %cst_82 = arith.constant 2.000000e+00 : f32
    %291 = vector.broadcast %cst_82 : f32 to vector<2x1x1xf32>
    %292 = arith.cmpf oge, %290, %291 : vector<2x1x1xf32>
    %293 = arith.select %292, %244, %237 : vector<2x1x1xi1>, vector<2x1x1xf32>
    %cst_83 = arith.constant 3.000000e+00 : f32
    %294 = vector.broadcast %cst_83 : f32 to vector<2x1x1xf32>
    %295 = arith.cmpf oge, %290, %294 : vector<2x1x1xf32>
    %296 = arith.select %295, %251, %293 : vector<2x1x1xi1>, vector<2x1x1xf32>
    %cst_84 = arith.constant 4.000000e+00 : f32
    %297 = vector.broadcast %cst_84 : f32 to vector<2x1x1xf32>
    %298 = arith.cmpf oge, %290, %297 : vector<2x1x1xf32>
    %299 = arith.select %298, %258, %296 : vector<2x1x1xi1>, vector<2x1x1xf32>
    %cst_85 = arith.constant 5.000000e+00 : f32
    %300 = vector.broadcast %cst_85 : f32 to vector<2x1x1xf32>
    %301 = arith.cmpf oge, %290, %300 : vector<2x1x1xf32>
    %302 = arith.select %301, %265, %299 : vector<2x1x1xi1>, vector<2x1x1xf32>
    %cst_86 = arith.constant 6.000000e+00 : f32
    %303 = vector.broadcast %cst_86 : f32 to vector<2x1x1xf32>
    %304 = arith.cmpf oge, %290, %303 : vector<2x1x1xf32>
    %305 = arith.select %304, %272, %302 : vector<2x1x1xi1>, vector<2x1x1xf32>
    %cst_87 = arith.constant 7.000000e+00 : f32
    %306 = vector.broadcast %cst_87 : f32 to vector<2x1x1xf32>
    %307 = arith.cmpf oge, %290, %306 : vector<2x1x1xf32>
    %308 = arith.select %307, %279, %305 : vector<2x1x1xi1>, vector<2x1x1xf32>
    %cst_88 = arith.constant 8.000000e+00 : f32
    %309 = vector.broadcast %cst_88 : f32 to vector<2x1x1xf32>
    %310 = arith.cmpf oge, %290, %309 : vector<2x1x1xf32>
    %311 = arith.select %310, %286, %308 : vector<2x1x1xi1>, vector<2x1x1xf32>
    %312 = vector.broadcast %311 : vector<2x1x1xf32> to vector<2x1x128xf32>
    %313 = arith.cmpf ogt, %164, %312 : vector<2x1x128xf32>
    %314 = arith.andi %172, %313 : vector<2x1x128xi1>
    %315 = arith.ori %233, %314 : vector<2x1x128xi1>
    %cst_89 = arith.constant -1.000000e+00 : f32
    %316 = vector.broadcast %cst_89 : f32 to vector<2x1x128xf32>
    %317 = arith.select %315, %316, %168 : vector<2x1x128xi1>, vector<2x1x128xf32>
    %c0_90 = arith.constant 0 : index
    %c0_91 = arith.constant 0 : index
    %c0_92 = arith.constant 0 : index
    %318 = vector.load %arg4[%c0_90, %c0_91, %c0_92] : memref<2x1x128xf32, #tpu.memory_space<vmem>>, vector<2x1x128xf32>
    tpu.vector_store %arg4[%c0_90, %c0_91, %c0_92], %317 {strides = array<i32>} : memref<2x1x128xf32, #tpu.memory_space<vmem>>, vector<2x1x128xf32>,
    return
  }
  func.func @transform_0(%arg0: i32) -> (i32, i32, i32) {
    %c0_i32 = arith.constant 0 : i32
    %c0_i32_0 = arith.constant 0 : i32
    %c0_i32_1 = arith.constant 0 : i32
    return %arg0, %c0_i32, %c0_i32_0 : i32, i32, i32
  }
  func.func @transform_1(%arg0: i32) -> (i32, i32, i32) {
    %c0_i32 = arith.constant 0 : i32
    %c0_i32_0 = arith.constant 0 : i32
    %c0_i32_1 = arith.constant 0 : i32
    return %arg0, %c0_i32, %c0_i32_0 : i32, i32, i32
  }
  func.func @transform_2(%arg0: i32) -> (i32, i32, i32) {
    %c0_i32 = arith.constant 0 : i32
    %c0_i32_0 = arith.constant 0 : i32
    %c0_i32_1 = arith.constant 0 : i32
    return %arg0, %c0_i32, %c0_i32_0 : i32, i32, i32
  }
  func.func @transform_3(%arg0: i32) -> (i32, i32, i32) {
    %c0_i32 = arith.constant 0 : i32
    %c0_i32_0 = arith.constant 0 : i32
    %c0_i32_1 = arith.constant 0 : i32
    return %arg0, %c0_i32, %c0_i32_0 : i32, i32, i32
  }
  func.func @transform_4(%arg0: i32) -> (i32, i32, i32) {
    %c0_i32 = arith.constant 0 : i32
    %c0_i32_0 = arith.constant 0 : i32
    %c0_i32_1 = arith.constant 0 : i32
    return %arg0, %c0_i32, %c0_i32_0 : i32, i32, i32
  }
}

</mosaic_0001>

<bundles_post_ra>
// kernel: tpu_custom_call.1
= control target key start
LH: loop header
LB: loop body
LE: loop exit
PB: predicated region body
PF: predicated region fallthrough
CT: control target
= control target key end

     0   :  { %10 = vsyncpa [#allocation3], 0  ;;  %s1046_s19 = smov 2   ;;  %s1693_s0 = inlined_call_operand.vmem [shape: f32[2,8,128], index: 0, kind: input, shape index: {}]   ;;  %s1694_s1 = inlined_call_operand.vmem [shape: f32[2,16,8], index: 1, kind: input, shape index: {}]   ;;  %s1695_s2 = inlined_call_operand.vmem [shape: f32[2,1,128], index: 2, kind: input, shape index: {}]   ;;  %s1696_s3 = inlined_call_operand.hbm [shape: f32[2,1,128], index: 3, kind: output, shape index: {0}]   ;;  %s1697_s4 = inlined_call_operand.hbm [shape: f32[2,8,128], index: 4, kind: output, shape index: {1}]  }
   0x1   :  { %v1093_v0 = vld [vmem:[%s1694_s1] sm:$0xff]  ;;  %v1098_v1 = vld [vmem:[%s1694_s1 + $0x10] sm:$0xff] }
   0x2   :  { %40 = vrot.lane.b32.xlu0 %v1093_v0, %s1046_s19  ;;  %44 = vrot.lane.b32.xlu1 %v1098_v1, %s1046_s19 }
   0x3   :  { %11 = vsyncpa [#allocation5], 0  ;;  %v1105_v2 = vld [vmem:[%s1694_s1 + $0x8] sm:$0xff]  ;;  %v1110_v3 = vld [vmem:[%s1694_s1 + $0x18] sm:$0xff]  ;;  %v1047_v4 = vmov 0   ;;  %v1048_v5 = vmov 2   ;;  %v60_v35 = vlaneseq }
   0x4   :  { %967 = vset.pattern.permute.xlu0 %v1047_v4  ;;  %965 = vset.pattern.permute.xlu1 %v1048_v5  ;;  %s1049_s1 = smov 127   ;;  %v1050_v22 = vmov 3   ;;  %v1051_v23 = vmov 1   ;;  %v1052_v24 = vmov 6   ;;  %v1053_v25 = vmov 4   ;;  %s1055_s24 = smov 124  }
   0x5   :  { %v1054_v26 = vmov 7   ;;  %v1205_v39 = vshrl.u32 %v60_v35, 7  ;;  %v1217_v42 = vld [vmem:[%s1693_s0] sm:$0xff]  ;;  %v1056_v45 = vmov 5   ;;  %v1249_v59 = vld [vmem:[%s1693_s0 + $0x8] sm:$0xff] }
   0x6   :  { %42 = vrot.lane.b32.xlu0 %v1105_v2, %s1046_s19  ;;  %46 = vrot.lane.b32.xlu1 %v1110_v3, %s1046_s19 }
   0x7   :  { %v1209_v40 = vsub.s32 2, %v1205_v39  ;;  %v1212_v41 = vsub.s32 0, %v1205_v39  ;;  %v376_v54 = vsub.s32 7, %v1205_v39 }
   0x9   :  { %v1224_v46 = vrot.slane %v1217_v42, %v1209_v40  ;;  %v1228_v47 = vrot.slane %v1217_v42, %v1212_v41  ;;  %v1259_v62 = vrot.slane %v1249_v59, %v1209_v40  ;;  %v1264_v63 = vrot.slane %v1249_v59, %v1212_v41 }
  0x74   :  { %v41_v6 = vpop.permute.xlu0 %40  ;;  %v45_v7 = vpop.permute.xlu1 %44 }
  0x75   :  { %v52_v8 = vsub.f32 %v1093_v0, %v41_v6  ;;  %v54_v9 = vsub.f32 %v1098_v1, %v45_v7 }
  0x77   :  { %v1118_v10 = vadd.f32 1.0, %v52_v8  ;;  %v1120_v11 = vadd.f32 1.0, %v54_v9 }
  0x78   :  { %v43_v12 = vpop.permute.xlu0 %42  ;;  %v47_v14 = vpop.permute.xlu1 %46 }
  0x79   :  { %v53_v13 = vsub.f32 %v1105_v2, %v43_v12  ;;  %212 = vrot.lane.b32.xlu0 %v1118_v10, %s1049_s1  ;;  %vm282_vm0 = vcmp.eq.f32.partialorder %v1118_v10, 1.0  ;;  %vm284_vm1 = vcmp.eq.f32.partialorder %v1120_v11, 1.0  ;;  %v55_v17 = vsub.f32 %v1110_v3, %v47_v14 }
  0x7a   :  { %v286_v16 = vsel %vm282_vm0, 1, %v1047_v4  ;;  %v288_v18 = vsel %vm284_vm1, 1, %v1047_v4  ;;  %v130_v12 = vsub.s32 3, %v1205_v39 }
  0x7b   :  { %v1125_v15 = vadd.f32 1.0, %v53_v13  ;;  %v1140_v20 = vadd.f32 1.0, %v55_v17 }
  0x7c   :  { %v131_v17 = vrot.slane %v1217_v42, %v130_v12 }
  0x7d   :  { %290 = vrot.lane.b32.xlu0 %v286_v16, %s1049_s1  ;;  %214 = vrot.lane.b32.xlu1 %v1125_v15, %s1049_s1  ;;  %vm283_vm2 = vcmp.eq.f32.partialorder %v1125_v15, 1.0  ;;  %vm285_vm3 = vcmp.eq.f32.partialorder %v1140_v20, 1.0 }
  0x7e   :  { %v287_v19 = vsel %vm283_vm2, 1, %v1047_v4  ;;  %v289_v21 = vsel %vm285_vm3, 1, %v1047_v4 }
  0x81   :  { %294 = vrot.lane.b32.xlu0 %v288_v18, %s1049_s1  ;;  %292 = vrot.lane.b32.xlu1 %v287_v19, %s1049_s1 }
  0x85   :  { %216 = vrot.lane.b32.xlu0 %v1120_v11, %s1049_s1  ;;  %218 = vrot.lane.b32.xlu1 %v1140_v20, %s1049_s1 }
  0x89   :  { %101 = vperm.xlu0 %967, %v1105_v2   ;;  %73 = vperm.xlu1 %965, %v1105_v2  }
  0x8d   :  { %296 = vrot.lane.b32.xlu1 %v289_v21, %s1049_s1  ;;  %968 = vset.pattern.permute.xlu0 %v1050_v22 }
  0x8e   :  { %137 = vperm.xlu0 %968, %v1093_v0  }
  0x91   :  { %77 = vperm.xlu1 %965, %v1098_v1  }
  0x92   :  { %149 = vperm.xlu0 %968, %v1110_v3  }
  0x95   :  { %966 = vset.pattern.permute.xlu1 %v1047_v4 }
  0x96   :  { %97 = vperm.xlu1 %966, %v1093_v0   ;;  %971 = vset.pattern.permute.xlu0 %v1051_v23 }
  0x97   :  { %169 = vperm.xlu0 %971, %v1105_v2  }
  0x9a   :  { %105 = vperm.xlu1 %966, %v1098_v1  }
  0x9b   :  { %972 = vset.pattern.permute.xlu0 %v1052_v24 }
  0x9c   :  { %315 = vperm.xlu0 %972, %v1093_v0  }
  0x9e   :  { %109 = vperm.xlu1 %966, %v1110_v3  }
  0xa0   :  { %327 = vperm.xlu0 %972, %v1110_v3  }
  0xa2   :  { %969 = vset.pattern.permute.xlu1 %v1050_v22 }
  0xa3   :  { %141 = vperm.xlu1 %969, %v1105_v2  }
  0xa4   :  { %975 = vset.pattern.permute.xlu0 %v1053_v25 }
  0xa5   :  { %347 = vperm.xlu0 %975, %v1105_v2  }
  0xa7   :  { %145 = vperm.xlu1 %969, %v1098_v1  }
  0xa9   :  { %976 = vset.pattern.permute.xlu0 %v1054_v26 }
  0xaa   :  { %383 = vperm.xlu0 %976, %v1093_v0  }
  0xab   :  { %970 = vset.pattern.permute.xlu1 %v1051_v23 }
  0xac   :  { %165 = vperm.xlu1 %970, %v1093_v0  }
  0xb0   :  { %173 = vperm.xlu1 %970, %v1098_v1  }
  0xb4   :  { %177 = vperm.xlu1 %970, %v1110_v3  }
  0xb8   :  { %973 = vset.pattern.permute.xlu1 %v1052_v24 }
  0xb9   :  { %319 = vperm.xlu1 %973, %v1105_v2  }
  0xbd   :  { %323 = vperm.xlu1 %973, %v1098_v1  }
  0xc1   :  { %974 = vset.pattern.permute.xlu1 %v1053_v25 }
  0xc2   :  { %343 = vperm.xlu1 %974, %v1093_v0  }
  0xc6   :  { %351 = vperm.xlu1 %974, %v1098_v1  }
  0xca   :  { %355 = vperm.xlu1 %974, %v1110_v3  }
  0xce   :  { %977 = vset.pattern.permute.xlu1 %v1054_v26 }
  0xeb   :  { %v213_v27 = vpop.permute.xlu0 %212 }
  0xec   :  { %v224_v56 = vmul.f32 %v213_v27, %v1118_v10 }
  0xef   :  { %v215_v28 = vpop.permute.xlu1 %214  ;;  %v291_v29 = vpop.permute.xlu0 %290 }
  0xf0   :  { %vm298_vm4 = vcmp.ne.s32.totalorder %v291_v29, 0  ;;  %v225_v7 = vmul.f32 %v215_v28, %v1125_v15  ;;  %v135_v28 = vrot.slane %v1249_v59, %v130_v12 }
  0xf1   :  { %vm1176_vm5 = vmand %vm282_vm0, %vm298_vm4 }
  0xf2   :  { %v494_v31 = vsel %vm1176_vm5, 1, %v1047_v4 }
  0xf3   :  { %v293_v32 = vpop.permute.xlu1 %292  ;;  %498 = vrot.lane.b32.xlu0 %v494_v31, %s1055_s24  ;;  %v295_v33 = vpop.permute.xlu0 %294 }
  0xf4   :  { %vm299_vm6 = vcmp.ne.s32.totalorder %v293_v32, 0  ;;  %vm300_vm7 = vcmp.ne.s32.totalorder %v295_v33, 0 }
  0xf5   :  { %vm1186_vm8 = vmand %vm283_vm2, %vm299_vm6 }
  0xf6   :  { %vm1192_vm9 = vmand %vm284_vm1, %vm300_vm7  ;;  %v495_v37 = vsel %vm1186_vm8, 1, %v1047_v4 }
  0xf7   :  { %500 = vrot.lane.b32.xlu1 %v495_v37, %s1055_s24  ;;  %v496_v38 = vsel %vm1192_vm9, 1, %v1047_v4  ;;  %v219_v43 = vpop.permute.xlu1 %218  ;;  %v1219_v44 = vpop.permute.xlu0 %216 }
  0xf8   :  { %502 = vrot.lane.b32.xlu0 %v496_v38, %s1055_s24  ;;  %v1252_v60 = vmul.f32 %v219_v43, %v1140_v20  ;;  %v226_v32 = vmul.f32 %v1219_v44, %v1120_v11 }
  0xfc   :  { %395 = vperm.xlu0 %976, %v1110_v3  }
 0x100   :  { %979 = vset.pattern.permute.xlu0 %v1056_v45 }
 0x101   :  { %415 = vperm.xlu0 %979, %v1105_v2  }
 0x104   :  { %v74_v48 = vpop.permute.xlu1 %73  ;;  %v102_v49 = vpop.permute.xlu0 %101 }
 0x105   :  { %v85_v50 = vmin.f32 %v1224_v46, %v74_v48  ;;  %980 = vset.pattern.permute.xlu0 %v1048_v5  ;;  %v113_v51 = vmax.f32 %v1228_v47, %v102_v49 }
 0x106   :  { %69 = vperm.xlu0 %980, %v1093_v0  }
 0x107   :  { %v117_v52 = vsub.f32 %v85_v50, %v113_v51  ;;  %v1292_v50 = vsub.s32 6, %v1205_v39 }
 0x108   :  { %v297_v53 = vpop.permute.xlu1 %296 }
 0x109   :  { %vm301_vm10 = vcmp.ne.s32.totalorder %v297_v53, 0  ;;  %v138_v58 = vpop.permute.xlu0 %137  ;;  %v121_v21 = vadd.f32 1.0, %v117_v52 }
 0x10a   :  { %vm1236_vm11 = vmand %vm285_vm3, %vm301_vm10  ;;  %81 = vperm.xlu0 %980, %v1110_v3   ;;  %v152_v27 = vmin.f32 %v131_v17, %v138_v58  ;;  %v309_v58 = vrot.slane %v1217_v42, %v1292_v50 }
 0x10b   :  { %v497_v55 = vsel %vm1236_vm11, 1, %v1047_v4  ;;  %v125_v25 = vmax.f32 %v121_v21, 0.0 }
 0x10c   :  { %504 = vrot.lane.b32.xlu1 %v497_v55, %s1055_s24  ;;  %v78_v57 = vpop.permute.xlu1 %77 }
 0x10d   :  { %v150_v6 = vpop.permute.xlu0 %149  ;;  %v86_v9 = vmin.f32 %v1259_v62, %v78_v57 }
 0x10e   :  { %238 = vperm.xlu0 %980, %v224_v56   ;;  %v155_v52 = vmin.f32 %v135_v28, %v150_v6 }
 0x110   :  { %387 = vperm.xlu1 %977, %v1105_v2   ;;  %v158_v2 = vsub.s32 1, %v1205_v39 }
 0x111   :  { %v1255_v61 = vpop.permute.xlu1 %97 }
 0x112   :  { %253 = vperm.xlu0 %980, %v1252_v60   ;;  %v159_v15 = vrot.slane %v1217_v42, %v158_v2  ;;  %v170_v16 = vpop.permute.xlu0 %169 }
 0x114   :  { %391 = vperm.xlu1 %977, %v1098_v1   ;;  %v181_v18 = vmax.f32 %v159_v15, %v170_v16  ;;  %v313_v16 = vrot.slane %v1249_v59, %v1292_v50 }
 0x115   :  { %v106_v8 = vpop.permute.xlu1 %105 }
 0x116   :  { %v114_v10 = vmax.f32 %v1264_v63, %v106_v8  ;;  %983 = vset.pattern.permute.xlu0 %v1052_v24 }
 0x117   :  { %459 = vperm.xlu0 %983, %v225_v7   ;;  %v316_v29 = vpop.permute.xlu0 %315 }
 0x118   :  { %v118_v13 = vsub.f32 %v86_v9, %v114_v10  ;;  %978 = vset.pattern.permute.xlu1 %v1056_v45  ;;  %v336_v45 = vsub.s32 4, %v1205_v39 }
 0x119   :  { %411 = vperm.xlu1 %978, %v1093_v0   ;;  %v1274_v14 = vpop.permute.xlu1 %109 }
 0x11a   :  { %v122_v51 = vadd.f32 1.0, %v118_v13  ;;  %v337_v44 = vrot.slane %v1217_v42, %v336_v45 }
 0x11b   :  { %984 = vset.pattern.permute.xlu0 %v1048_v5  ;;  %v328_v49 = vpop.permute.xlu0 %327 }
 0x11d   :  { %419 = vperm.xlu1 %978, %v1098_v1  }
 0x11e   :  { %v142_v19 = vpop.permute.xlu1 %141 }
 0x11f   :  { %v153_v20 = vmin.f32 %v131_v17, %v142_v19  ;;  %v341_v19 = vrot.slane %v1249_v59, %v336_v45 }
 0x120   :  { %v348_v9 = vpop.permute.xlu0 %347 }
 0x121   :  { %v185_v22 = vsub.f32 %v153_v20, %v181_v18  ;;  %423 = vperm.xlu1 %978, %v1110_v3   ;;  %v163_v3 = vrot.slane %v1249_v59, %v158_v2  ;;  %v359_v10 = vmax.f32 %v337_v44, %v348_v9 }
 0x122   :  { %v146_v23 = vpop.permute.xlu1 %145 }
 0x123   :  { %v189_v0 = vadd.f32 1.0, %v185_v22  ;;  %v154_v37 = vmin.f32 %v135_v28, %v146_v23 }
 0x125   :  { %v193_v26 = vmax.f32 %v189_v0, 0.0  ;;  %981 = vset.pattern.permute.xlu1 %v1048_v5  ;;  %v333_v0 = vmin.f32 %v313_v16, %v328_v49  ;;  %v404_v49 = vsub.s32 5, %v1205_v39 }
 0x126   :  { %243 = vperm.xlu1 %981, %v225_v7   ;;  %v126_v7 = vmax.f32 %v122_v51, 0.0 }
 0x127   :  { %v166_v31 = vpop.permute.xlu1 %165  ;;  %v1283_v1 = vmul.f32 %v193_v26, %v125_v25 }
 0x128   :  { %v180_v33 = vmax.f32 %v159_v15, %v166_v31  ;;  %v330_v15 = vmin.f32 %v309_v58, %v316_v29 }
 0x12a   :  { %v1288_v38 = vsub.f32 %v152_v27, %v180_v33  ;;  %248 = vperm.xlu1 %981, %v226_v32  }
 0x12b   :  { %v174_v43 = vpop.permute.xlu1 %173 }
 0x12c   :  { %v182_v48 = vmax.f32 %v163_v3, %v174_v43  ;;  %v188_v51 = vadd.f32 1.0, %v1288_v38  ;;  %v377_v38 = vrot.slane %v1217_v42, %v376_v54 }
 0x12e   :  { %v186_v53 = vsub.f32 %v154_v37, %v182_v48  ;;  %982 = vset.pattern.permute.xlu1 %v1052_v24  ;;  %v112_v48 = vmax.f32 %v1228_v47, %v1255_v61  ;;  %v28_v47 = vrot.slane %v1217_v42, 6 }
 0x12f   :  { %455 = vperm.xlu1 %982, %v224_v56   ;;  %v178_v11 = vpop.permute.xlu1 %177 }
 0x130   :  { %v190_v55 = vadd.f32 1.0, %v186_v53  ;;  %v183_v57 = vmax.f32 %v163_v3, %v178_v11  ;;  %v115_v11 = vmax.f32 %v1264_v63, %v1274_v14  ;;  %v32_v63 = vsub.f32 %v1217_v42, %v28_v47 }
 0x132   :  { %v194_v8 = vmax.f32 %v190_v55, 0.0  ;;  %v187_v2 = vsub.f32 %v155_v52, %v183_v57  ;;  %v405_v57 = vrot.slane %v1217_v42, %v404_v49 }
 0x133   :  { %463 = vperm.xlu1 %982, %v226_v32  }
 0x134   :  { %v320_v12 = vpop.permute.xlu1 %319  ;;  %v1298_v6 = vmul.f32 %v194_v8, %v126_v7  ;;  %v191_v61 = vadd.f32 1.0, %v187_v2 }
 0x135   :  { %v331_v13 = vmin.f32 %v309_v58, %v320_v12 }
 0x136   :  { %v195_v39 = vmax.f32 %v191_v61, 0.0 }
 0x137   :  { %467 = vperm.xlu1 %982, %v1252_v60   ;;  %v1301_v24 = vsub.f32 %v331_v13, %v359_v10 }
 0x138   :  { %v324_v56 = vpop.permute.xlu1 %323 }
 0x139   :  { %v332_v20 = vmin.f32 %v313_v16, %v324_v56  ;;  %v1346_v16 = vadd.f32 1.0, %v32_v63 }
 0x13b   :  { %985 = vset.pattern.permute.xlu1 %v1048_v5  ;;  %v1313_v5 = vpop.permute.xlu0 %383  ;;  %vm272_vm4 = vcmp.eq.f32.partialorder %v1346_v16, 1.0 }
 0x13c   :  { %v398_v42 = vmin.f32 %v377_v38, %v1313_v5 }
 0x13d   :  { %v344_v17 = vpop.permute.xlu1 %343 }
 0x13e   :  { %v358_v18 = vmax.f32 %v337_v44, %v344_v17  ;;  %v29_v17 = vrot.slane %v1249_v59, 6 }
 0x140   :  { %v1307_v21 = vsub.f32 %v330_v15, %v358_v18  ;;  %v202_v18 = vrot.slane %v1346_v16, 1 }
 0x141   :  { %v352_v22 = vpop.permute.xlu1 %351 }
 0x142   :  { %v360_v23 = vmax.f32 %v341_v19, %v352_v22 }
 0x144   :  { %v1309_v60 = vsub.f32 %v332_v20, %v360_v23 }
 0x145   :  { %v356_v25 = vpop.permute.xlu1 %355 }
 0x146   :  { %v361_v26 = vmax.f32 %v341_v19, %v356_v25  ;;  %v366_v25 = vadd.f32 1.0, %v1307_v21 }
 0x148   :  { %v1311_v27 = vsub.f32 %v333_v0, %v361_v26  ;;  %v367_v0 = vadd.f32 1.0, %v1301_v24  ;;  %v33_v26 = vsub.f32 %v1249_v59, %v29_v17  ;;  %v409_v24 = vrot.slane %v1249_v59, %v404_v49 }
 0x165   :  { %v499_v28 = vpop.permute.xlu0 %498 }
 0x166   :  { %vm506_vm12 = vcmp.ne.s32.totalorder %v499_v28, 0 }
 0x167   :  { %vm510_vm13 = vmand %vm1176_vm5, %vm506_vm12 }
 0x168   :  { %v518_v29 = vsel %vm510_vm13, 1, %v1047_v4 }
 0x169   :  { %v501_v31 = vpop.permute.xlu1 %500  ;;  %523 = vperm.xlu0 %984, %v518_v29   ;;  %v206_v29 = vmul.f32 %v202_v18, %v1346_v16 }
 0x16a   :  { %vm507_vm14 = vcmp.ne.s32.totalorder %v501_v31, 0  ;;  %v503_v32 = vpop.permute.xlu0 %502 }
 0x16b   :  { %vm511_vm15 = vmand %vm1186_vm8, %vm507_vm14  ;;  %vm508_vm0 = vcmp.ne.s32.totalorder %v503_v32, 0 }
 0x16c   :  { %v519_v33 = vsel %vm511_vm15, 1, %v1047_v4  ;;  %vm512_vm1 = vmand %vm1192_vm9, %vm508_vm0 }
 0x16d   :  { %526 = vperm.xlu1 %985, %v519_v33   ;;  %v520_v3 = vsel %vm512_vm1, 1, %v1047_v4 }
 0x171   :  { %529 = vperm.xlu1 %985, %v520_v3   ;;  %v371_v3 = vmax.f32 %v367_v0, 0.0 }
 0x177   :  { %v1324_v30 = vpop.permute.xlu0 %395 }
 0x17c   :  { %v416_v37 = vpop.permute.xlu0 %415 }
 0x17d   :  { %v427_v10 = vmax.f32 %v405_v57, %v416_v37  ;;  %v449_v37 = vrot.slane %v206_v29, %v1292_v50 }
 0x17e   :  { %v505_v43 = vpop.permute.xlu1 %504 }
 0x17f   :  { %vm509_vm2 = vcmp.ne.s32.totalorder %v505_v43, 0  ;;  %v370_v43 = vmax.f32 %v366_v25, 0.0 }
 0x180   :  { %vm513_vm3 = vmand %vm1236_vm11, %vm509_vm2 }
 0x181   :  { %v70_v34 = vpop.permute.xlu0 %69  ;;  %v521_v45 = vsel %vm513_vm3, 1, %v1047_v4 }
 0x182   :  { %v84_v36 = vmin.f32 %v1224_v46, %v70_v34  ;;  %532 = vperm.xlu0 %984, %v521_v45   ;;  %v192_v46 = vmax.f32 %v188_v51, 0.0  ;;  %v1356_v34 = vadd.f32 1.0, %v33_v26 }
 0x184   :  { %v116_v52 = vsub.f32 %v84_v36, %v112_v48  ;;  %v381_v36 = vrot.slane %v1249_v59, %v376_v54  ;;  %vm273_vm5 = vcmp.eq.f32.partialorder %v1356_v34, 1.0 }
 0x185   :  { %v82_v53 = vpop.permute.xlu0 %81 }
 0x186   :  { %v120_v44 = vadd.f32 1.0, %v116_v52  ;;  %v87_v55 = vmin.f32 %v1259_v62, %v82_v53  ;;  %v203_v53 = vrot.slane %v1356_v34, 1  ;;  %v401_v59 = vmin.f32 %v381_v36, %v1324_v30 }
 0x187   :  { %v369_v30 = vadd.f32 1.0, %v1311_v27 }
 0x188   :  { %v124_v58 = vmax.f32 %v120_v44, 0.0  ;;  %v119_v7 = vsub.f32 %v87_v55, %v115_v11  ;;  %v231_v55 = vrot.slane %v206_v29, %v1209_v40  ;;  %v207_v61 = vmul.f32 %v203_v53, %v1356_v34 }
 0x189   :  { %v239_v56 = vpop.permute.xlu0 %238 }
 0x18a   :  { %v123_v8 = vadd.f32 1.0, %v119_v7  ;;  %v1341_v9 = vmul.f32 %v192_v46, %v124_v58  ;;  %v256_v54 = vadd.f32 %v239_v56, %v231_v55  ;;  %v453_v18 = vrot.slane %v207_v61, %v1292_v50 }
 0x18b   :  { %v388_v14 = vpop.permute.xlu1 %387 }
 0x18c   :  { %v127_v12 = vmax.f32 %v123_v8, 0.0  ;;  %v399_v62 = vmin.f32 %v377_v38, %v388_v14  ;;  %v235_v8 = vrot.slane %v207_v61, %v1209_v40 }
 0x18d   :  { %v254_v22 = vpop.permute.xlu0 %253 }
 0x18e   :  { %v1344_v13 = vmul.f32 %v195_v39, %v127_v12  ;;  %v431_v2 = vsub.f32 %v399_v62, %v427_v10  ;;  %v368_v39 = vadd.f32 1.0, %v1309_v60  ;;  %v260_v10 = vsub.f32 %v256_v54, %v1341_v9 }
 0x18f   :  { %v392_v15 = vpop.permute.xlu1 %391  ;;  %v259_v56 = vadd.f32 %v254_v22, %v235_v8 }
 0x190   :  { %v435_v19 = vadd.f32 1.0, %v431_v2  ;;  %v400_v11 = vmin.f32 %v381_v36, %v392_v15 }
 0x191   :  { %v263_v29 = vsub.f32 %v259_v56, %v1344_v13 }
 0x192   :  { %v439_v31 = vmax.f32 %v435_v19, 0.0  ;;  %v460_v5 = vpop.permute.xlu0 %459  ;;  %v372_v19 = vmax.f32 %v368_v39, 0.0 }
 0x193   :  { %v471_v52 = vadd.f32 %v460_v5, %v449_v37 }
 0x194   :  { %v412_v20 = vpop.permute.xlu1 %411  ;;  %v443_v48 = vmul.f32 %v439_v31, %v371_v3 }
 0x195   :  { %v426_v23 = vmax.f32 %v405_v57, %v412_v20 }
 0x196   :  { %v475_v57 = vsub.f32 %v471_v52, %v443_v48 }
 0x197   :  { %v430_v28 = vsub.f32 %v398_v42, %v426_v23 }
 0x198   :  { %v420_v32 = vpop.permute.xlu1 %419  ;;  %986 = vrcp.f32 %v475_v57 }
 0x199   :  { %v434_v33 = vadd.f32 1.0, %v430_v28  ;;  %v428_v44 = vmax.f32 %v409_v24, %v420_v32  ;;  %v373_v28 = vmax.f32 %v369_v30, 0.0 }
 0x19b   :  { %v438_v45 = vmax.f32 %v434_v33, 0.0  ;;  %v432_v58 = vsub.f32 %v400_v11, %v428_v44 }
 0x19c   :  { %v424_v21 = vpop.permute.xlu1 %423 }
 0x19d   :  { %v442_v51 = vmul.f32 %v438_v45, %v370_v43  ;;  %v429_v7 = vmax.f32 %v409_v24, %v424_v21  ;;  %v436_v63 = vadd.f32 1.0, %v432_v58 }
 0x19f   :  { %v433_v14 = vsub.f32 %v401_v59, %v429_v7  ;;  %v440_v15 = vmax.f32 %v436_v63, 0.0 }
 0x1a1   :  { %v244_v47 = vpop.permute.xlu1 %243  ;;  %v437_v2 = vadd.f32 1.0, %v433_v14  ;;  %v444_v60 = vmul.f32 %v440_v15, %v372_v19 }
 0x1a2   :  { %v257_v46 = vadd.f32 %v244_v47, %v231_v55 }
 0x1a3   :  { %v441_v0 = vmax.f32 %v437_v2, 0.0 }
 0x1a4   :  { %v261_v49 = vsub.f32 %v257_v46, %v1283_v1 }
 0x1a5   :  { %v249_v38 = vpop.permute.xlu1 %248  ;;  %v987_v26 = vpop.eup %986  ;;  %v445_v27 = vmul.f32 %v441_v0, %v373_v28 }
 0x1a6   :  { %988 = vrcp.f32 %v261_v49  ;;  %v258_v12 = vadd.f32 %v249_v38, %v235_v8  ;;  %v483_v3 = vmul.f32 %v987_v26, %v443_v48 }
 0x1a7   :  { %990 = vrcp.f32 %v260_v10 }
 0x1a8   :  { %v262_v20 = vsub.f32 %v258_v12, %v1298_v6 }
 0x1aa   :  { %v456_v62 = vpop.permute.xlu1 %455 }
 0x1ab   :  { %v470_v17 = vadd.f32 %v456_v62, %v449_v37 }
 0x1ad   :  { %v474_v42 = vsub.f32 %v470_v17, %v442_v51 }
 0x1ae   :  { %v464_v23 = vpop.permute.xlu1 %463 }
 0x1af   :  { %992 = vrcp.f32 %v474_v42  ;;  %v472_v25 = vadd.f32 %v464_v23, %v453_v18 }
 0x1b0   :  { %994 = vrcp.f32 %v262_v20 }
 0x1b1   :  { %v476_v31 = vsub.f32 %v472_v25, %v444_v60 }
 0x1b2   :  { %v468_v50 = vpop.permute.xlu1 %467 }
 0x1b3   :  { %v989_v32 = vpop.eup %988  ;;  %996 = vrcp.f32 %v476_v31  ;;  %v473_v33 = vadd.f32 %v468_v50, %v453_v18 }
 0x1b4   :  { %v269_v22 = vmul.f32 %v989_v32, %v1283_v1  ;;  %998 = vrcp.f32 %v263_v29  ;;  %v991_v5 = vpop.eup %990  ;;  %v274_v1 = vsel %vm272_vm4, 1, %v1047_v4 }
 0x1b5   :  { %v477_v37 = vsub.f32 %v473_v33, %v445_v27  ;;  %v268_v24 = vmul.f32 %v991_v5, %v1341_v9  ;;  %v276_v61 = vrot.slane %v274_v1, 1  ;;  %v275_v9 = vsel %vm273_vm5, 1, %v1047_v4 }
 0x1b6   :  { %v515_v43 = vmul.f32 %v483_v3, %v269_v22  ;;  %v277_v16 = vrot.slane %v275_v9, 1  ;;  %v1389_v5 = vand.u32 127, %v60_v35 }
 0x1b7   :  { %1000 = vrcp.f32 %v477_v37  ;;  %vm278_vm6 = vcmp.ne.s32.totalorder %v276_v61, 0 }
 0x1b8   :  { %vm280_vm7 = vmand %vm272_vm4, %vm278_vm6  ;;  %vm279_vm8 = vcmp.ne.s32.totalorder %v277_v16, 0 }
 0x1b9   :  { %vm281_vm9 = vmand %vm273_vm5, %vm279_vm8 }
 0x1ba   :  { %v487_v7 = vsel %vm281_vm9, 1, %v1047_v4 }
 0x1bc   :  { %v993_v45 = vpop.eup %992 }
 0x1bd   :  { %v482_v21 = vmul.f32 %v993_v45, %v442_v51  ;;  %v995_v36 = vpop.eup %994 }
 0x1be   :  { %v270_v11 = vmul.f32 %v995_v36, %v1298_v6  ;;  %v486_v6 = vsel %vm280_vm7, 1, %v1047_v4  ;;  %v1058_v36 = vmov -1.0  }
 0x1bf   :  { %v514_v52 = vmul.f32 %v482_v21, %v268_v24  ;;  %v488_v51 = vrot.slane %v486_v6, 4 }
 0x1c0   :  { %v997_v53 = vpop.eup %996 }
 0x1c1   :  { %v484_v44 = vmul.f32 %v997_v53, %v444_v60  ;;  %v999_v55 = vpop.eup %998  ;;  %vm490_vm10 = vcmp.ne.s32.totalorder %v488_v51, 0  ;;  %v1057_v60 = vmov 0.0  }
 0x1c2   :  { %v271_v47 = vmul.f32 %v999_v55, %v1344_v13  ;;  %vm492_vm11 = vmand %vm280_vm7, %vm490_vm10  ;;  %v489_v13 = vrot.slane %v487_v7, 4 }
 0x1c3   :  { %v516_v48 = vmul.f32 %v484_v44, %v270_v11  ;;  %v542_v49 = vsel %vm492_vm11, 1, %v1047_v4  ;;  %vm629_vm11 = vcmp.lt.s32.totalorder %v1389_v5, 16  ;;  %v1393_v11 = vcvt.s32.f32 %v1389_v5 }
 0x1c4   :  { %v1001_v57 = vpop.eup %1000  ;;  %vm491_vm12 = vcmp.ne.s32.totalorder %v489_v13, 0  ;;  %v547_v34 = vrot.slane %v542_v49, %v1209_v40 }
 0x1c5   :  { %v485_v46 = vmul.f32 %v1001_v57, %v445_v27  ;;  %vm493_vm13 = vmand %vm281_vm9, %vm491_vm12 }
 0x1c6   :  { %vm552_vm14 = vcmp.eq.s32.totalorder %v547_v34, 1  ;;  %v543_v54 = vsel %vm493_vm13, 1, %v1047_v4 }
 0x1c7   :  { %v517_v58 = vmul.f32 %v485_v46, %v271_v47  ;;  %v551_v14 = vrot.slane %v543_v54, %v1209_v40 }
 0x1c9   :  { %vm553_vm1 = vcmp.eq.s32.totalorder %v551_v14, 1 }
 0x1e4   :  { %v524_v59 = vpop.permute.xlu0 %523 }
 0x1e5   :  { %vm534_vm15 = vcmp.eq.s32.totalorder %v524_v59, 1 }
 0x1e6   :  { %v538_v38 = vsel %vm534_vm15, 0.0, %v514_v52 }
 0x1e7   :  { %v554_v8 = vsel %vm552_vm14, -1.0, %v538_v38 }
 0x1e8   :  { %v527_v63 = vpop.permute.xlu1 %526  ;;  %572 = vmax.xlane.f32.xlu1 %v554_v8 }
 0x1e9   :  { %vm535_vm0 = vcmp.eq.s32.totalorder %v527_v63, 1 }
 0x1ea   :  { %v539_v39 = vsel %vm535_vm0, 0.0, %v515_v43 }
 0x1eb   :  { %v555_v10 = vsel %vm552_vm14, -1.0, %v539_v39 }
 0x1ec   :  { %v530_v12 = vpop.permute.xlu1 %529  ;;  %574 = vmax.xlane.f32.xlu0 %v555_v10  ;;  %v558_v18 = vmax.f32 %v554_v8, %v555_v10 }
 0x1ed   :  { %vm536_vm2 = vcmp.eq.s32.totalorder %v530_v12, 1 }
 0x1ee   :  { %v540_v62 = vsel %vm536_vm2, 0.0, %v516_v48  ;;  %v559_v19 = vrot.slane %v558_v18, 4 }
 0x1ef   :  { %v556_v15 = vsel %vm553_vm1, -1.0, %v540_v62 }
 0x1f0   :  { %576 = vmax.xlane.f32.xlu0 %v556_v15  ;;  %v560_v30 = vmax.f32 %v558_v18, %v559_v19 }
 0x1f2   :  { %v561_v20 = vrot.slane %v560_v30, 2 }
 0x1f4   :  { %v562_v0 = vmax.f32 %v560_v30, %v561_v20 }
 0x1f6   :  { %v563_v31 = vrot.slane %v562_v0, 1 }
 0x1f8   :  { %v564_v33 = vmax.f32 %v562_v0, %v563_v31 }
 0x1fa   :  { %vm614_vm8 = vcmp.lt.f32.partialorder %v564_v33, 0.3  ;;  %vm622_vm12 = vcmp.ge.f32.partialorder %v564_v33, 0.7 }
 0x1fb   :  { %v616_v52 = vsel %vm614_vm8, 0.0, %v1058_v36 }
 0x1fd   :  { %v533_v2 = vpop.permute.xlu0 %532 }
 0x1fe   :  { %vm537_vm3 = vcmp.eq.s32.totalorder %v533_v2, 1 }
 0x1ff   :  { %v541_v17 = vsel %vm537_vm3, 0.0, %v517_v58 }
 0x200   :  { %v557_v4 = vsel %vm553_vm1, -1.0, %v541_v17 }
 0x201   :  { %578 = vmax.xlane.f32.xlu1 %v557_v4  ;;  %v565_v50 = vmax.f32 %v556_v15, %v557_v4 }
 0x203   :  { %v566_v22 = vrot.slane %v565_v50, 4 }
 0x205   :  { %v567_v45 = vmax.f32 %v565_v50, %v566_v22 }
 0x207   :  { %v568_v44 = vrot.slane %v567_v45, 2 }
 0x209   :  { %v569_v47 = vmax.f32 %v567_v45, %v568_v44 }
 0x20b   :  { %v570_v16 = vrot.slane %v569_v47, 1 }
 0x20d   :  { %v571_v7 = vmax.f32 %v569_v47, %v570_v16  ;;  %v25_v16 = vld [vmem:[%s1695_s2 + $0x1] sm:$0x1] }
 0x20f   :  { %vm615_vm1 = vcmp.lt.f32.partialorder %v571_v7, 0.3  ;;  %vm623_vm3 = vcmp.ge.f32.partialorder %v571_v7, 0.7 }
 0x210   :  { %v617_v59 = vsel %vm615_vm1, 0.0, %v1058_v36 }
 0x271   :  { %v573_v56 = vpop.xlane.xlu1 %572 }
 0x272   :  { %vm580_vm4 = vcmp.eq.f32.partialorder %v573_v56, 0.0 }
 0x273   :  { %v584_v40 = vsel %vm580_vm4, 1e-05, %v573_v56 }
 0x274   :  { %vm588_vm5 = vcmp.eq.f32.partialorder %v554_v8, %v584_v40 }
 0x275   :  { %v575_v42 = vpop.xlane.xlu0 %574  ;;  %v930_v25 = vsel %vm588_vm5, 1.0, %v1057_v60 }
 0x276   :  { %vm581_vm6 = vcmp.eq.f32.partialorder %v575_v42, 0.0 }
 0x277   :  { %v585_v23 = vsel %vm581_vm6, 1e-05, %v575_v42 }
 0x278   :  { %vm589_vm7 = vcmp.eq.f32.partialorder %v555_v10, %v585_v23 }
 0x279   :  { %v931_v26 = vsel %vm589_vm7, 1.0, %v1057_v60  ;;  %v577_v37 = vpop.xlane.xlu0 %576 }
 0x27a   :  { %v600_v28 = vadd.f32 %v931_v26, %v930_v25  ;;  %vm582_vm9 = vcmp.eq.f32.partialorder %v577_v37, 0.0 }
 0x27b   :  { %v586_v21 = vsel %vm582_vm9, 1e-05, %v577_v37 }
 0x27c   :  { %v601_v29 = vrot.slane %v600_v28, 4  ;;  %vm590_vm13 = vcmp.eq.f32.partialorder %v556_v15, %v586_v21 }
 0x27d   :  { %v932_v46 = vsel %vm590_vm13, 1.0, %v1057_v60 }
 0x27e   :  { %v602_v32 = vadd.f32 %v601_v29, %v600_v28 }
 0x280   :  { %v603_v27 = vrot.slane %v602_v32, 2 }
 0x282   :  { %v604_v3 = vadd.f32 %v603_v27, %v602_v32 }
 0x284   :  { %v605_v43 = vrot.slane %v604_v3, 1 }
 0x286   :  { %v606_v24 = vadd.f32 %v605_v43, %v604_v3 }
 0x288   :  { %vm618_vm10 = vcmp.gt.f32.partialorder %v606_v24, 0.0  ;;  %v24_v24 = vld [vmem:[%s1695_s2] sm:$0x1]  ;;  %s1059_s2 = smov [#allocation4]  }
 0x289   :  { %v620_v53 = vsel %vm618_vm10, 1.0, %v616_v52  ;;  %s915_s6 = sshll.u32 %s1059_s2, 4  ;;  %s916_s6 = int_to_ptr.vmem [resolvable:$true] %s915_s6 }
 0x28a   :  { %v579_v55 = vpop.xlane.xlu1 %578  ;;  %v624_v1 = vsel %vm622_vm12, 1.0, %v620_v53  ;;  %s1002_s7 = scalar_lea.vmem %s916_s6, 256  ;;  %p1007_p1 = scmp.lt.s32.totalorder %s916_s6, %s916_s6 }
 0x28b   :  { %vm583_vm14 = vcmp.eq.f32.partialorder %v579_v55, 0.0  ;;  %v1397_v35 = vsel %vm629_vm11, %v624_v1, -1.0  ;;  %p1003_p0 = scmp.ne.s32.totalorder %s916_s6, %s1002_s7  ;;  %p1008_p2 = scmp.lt.s32.totalorder %s1002_s7, %s1002_s7 }
 0x28c   :  { %v587_v48 = vsel %vm583_vm14, 1e-05, %v579_v55  ;;  %vm1698_vm15 = vcmp.eq.f32.partialorder %v1397_v35, 0.0 }
 0x28d   :  { %vm591_vm0 = vcmp.eq.f32.partialorder %v557_v4, %v587_v48  ;;  %v780_v57 = vsel %vm1698_vm15, %v1393_v11, 128.0  ;;  %v936_v36 = vsel %vm1698_vm15, 1.0, %v1057_v60  ;;  %p1009_p3 = por %p1008_p2, %p1007_p1 }
 0x28e   :  { %v933_v61 = vsel %vm591_vm0, 1.0, %v1057_v60  ;;  %782 = vmin.xlane.f32.xlu0 %v780_v57 }
 0x28f   :  { %v607_v58 = vadd.f32 %v933_v61, %v932_v46  ;;  %p1010_p4 = pnand %p1009_p3, %p1003_p0 }
 0x291   :  { %v608_v9 = vrot.slane %v607_v58, 4 }
 0x293   :  { %v609_v6 = vadd.f32 %v608_v9, %v607_v58 }
 0x295   :  { %v610_v51 = vrot.slane %v609_v6, 2 }
 0x297   :  { %v611_v13 = vadd.f32 %v610_v51, %v609_v6 }
 0x299   :  { %v612_v49 = vrot.slane %v611_v13, 1 }
 0x29b   :  { %v613_v34 = vadd.f32 %v612_v49, %v611_v13 }
 0x29d   :  { %vm619_vm2 = vcmp.gt.f32.partialorder %v613_v34, 0.0 }
 0x29e   :  { %v621_v54 = vsel %vm619_vm2, 1.0, %v617_v59 }
 0x29f   :  { %v625_v38 = vsel %vm623_vm3, 1.0, %v621_v54 }
 0x2a0   :  { %v1407_v8 = vsel %vm629_vm11, %v625_v38, -1.0 }
 0x2a1   :  { %vm635_vm4 = vcmp.eq.f32.partialorder %v1407_v8, 0.0 }
 0x2a2   :  { %v781_v63 = vsel %vm635_vm4, %v1393_v11, 128.0 }
 0x2a3   :  { %784 = vmin.xlane.f32.xlu1 %v781_v63 }
 0x317   :  { %v1413_v14 = vpop.xlane.xlu0 %782 }
 0x318   :  { %vm786_vm5 = vcmp.gt.f32.partialorder %v1393_v11, %v1413_v14 }
 0x319   :  { %vm788_vm6 = vmand %vm1698_vm15, %vm786_vm5 }
 0x31a   :  { %v790_v39 = vsel %vm788_vm6, %v1393_v11, 128.0 }
 0x31b   :  { %792 = vmin.xlane.f32.xlu0 %v790_v39  ;;  %v937_v39 = vsel %vm635_vm4, 1.0, %v1057_v60 }
 0x32c   :  { %v1420_v10 = vpop.xlane.xlu1 %784 }
 0x32d   :  { %vm787_vm7 = vcmp.gt.f32.partialorder %v1393_v11, %v1420_v10 }
 0x32e   :  { %vm789_vm8 = vmand %vm635_vm4, %vm787_vm7 }
 0x32f   :  { %v791_v12 = vsel %vm789_vm8, %v1393_v11, 128.0 }
 0x330   :  { %794 = vmin.xlane.f32.xlu1 %v791_v12 }
 0x3a4   :  { %v1427_v62 = vpop.xlane.xlu0 %792 }
 0x3a5   :  { %vm796_vm9 = vcmp.gt.f32.partialorder %v1393_v11, %v1427_v62 }
 0x3a6   :  { %vm798_vm10 = vmand %vm788_vm6, %vm796_vm9  ;;  %vm632_vm6 = vcmp.eq.f32.partialorder %v1397_v35, 1.0  ;;  %vm633_vm9 = vcmp.eq.f32.partialorder %v1407_v8, 1.0 }
 0x3a7   :  { %v800_v15 = vsel %vm798_vm10, %v1393_v11, 128.0  ;;  %v740_v42 = vsel %vm632_vm6, %v1393_v11, 128.0  ;;  %v741_v26 = vsel %vm633_vm9, %v1393_v11, 128.0  ;;  %v934_v52 = vsel %vm632_vm6, 1.0, %v1057_v60 }
 0x3a8   :  { %802 = vmin.xlane.f32.xlu0 %v800_v15  ;;  %v935_v12 = vsel %vm633_vm9, 1.0, %v1057_v60 }
 0x3b9   :  { %v1432_v2 = vpop.xlane.xlu1 %794 }
 0x3ba   :  { %vm797_vm12 = vcmp.gt.f32.partialorder %v1393_v11, %v1432_v2 }
 0x3bb   :  { %vm799_vm13 = vmand %vm789_vm8, %vm797_vm12 }
 0x3bc   :  { %v801_v17 = vsel %vm799_vm13, %v1393_v11, 128.0 }
 0x3bd   :  { %804 = vmin.xlane.f32.xlu1 %v801_v17 }
 0x431   :  { %v1437_v4 = vpop.xlane.xlu0 %802 }
 0x432   :  { %vm806_vm14 = vcmp.gt.f32.partialorder %v1393_v11, %v1437_v4 }
 0x433   :  { %vm808_vm0 = vmand %vm798_vm10, %vm806_vm14 }
 0x434   :  { %v810_v18 = vsel %vm808_vm0, %v1393_v11, 128.0 }
 0x435   :  { %812 = vmin.xlane.f32.xlu0 %v810_v18 }
 0x446   :  { %v1442_v19 = vpop.xlane.xlu1 %804 }
 0x447   :  { %vm807_vm1 = vcmp.gt.f32.partialorder %v1393_v11, %v1442_v19 }
 0x448   :  { %vm809_vm2 = vmand %vm799_vm13, %vm807_vm1 }
 0x449   :  { %v811_v30 = vsel %vm809_vm2, %v1393_v11, 128.0 }
 0x44a   :  { %814 = vmin.xlane.f32.xlu1 %v811_v30 }
 0x4be   :  { %v1447_v56 = vpop.xlane.xlu0 %812 }
 0x4bf   :  { %vm816_vm3 = vcmp.gt.f32.partialorder %v1393_v11, %v1447_v56 }
 0x4c0   :  { %vm1451_vm5 = vmand %vm808_vm0, %vm816_vm3 }
 0x4c1   :  { %v820_v20 = vsel %vm1451_vm5, %v1393_v11, 128.0 }
 0x4c2   :  { %822 = vmin.xlane.f32.xlu0 %v820_v20 }
 0x4c6   :  { %742 = vmin.xlane.f32.xlu0 %v740_v42 }
 0x4d3   :  { %v1462_v23 = vpop.xlane.xlu1 %814 }
 0x4d4   :  { %vm817_vm7 = vcmp.gt.f32.partialorder %v1393_v11, %v1462_v23 }
 0x4d5   :  { %vm1466_vm8 = vmand %vm809_vm2, %vm817_vm7 }
 0x4d6   :  { %v821_v25 = vsel %vm1466_vm8, %v1393_v11, 128.0 }
 0x4d7   :  { %824 = vmin.xlane.f32.xlu1 %v821_v25 }
 0x4db   :  { %744 = vmin.xlane.f32.xlu1 %v741_v26 }
 0x54b   :  { %v1477_v28 = vpop.xlane.xlu0 %822 }
 0x54c   :  { %vm826_vm10 = vcmp.gt.f32.partialorder %v1393_v11, %v1477_v28 }
 0x54d   :  { %vm1483_vm12 = vmand %vm1451_vm5, %vm826_vm10  ;;  %vm651_vm5 = vcmp.ge.f32.partialorder %v24_v24, 0.5  ;;  %vm644_vm10 = vcmp.gt.f32.partialorder %v24_v24, 0.8 }
 0x54e   :  { %v830_v31 = vsel %vm1483_vm12, %v1393_v11, 128.0  ;;  %vm653_vm7 = vmand %vm632_vm6, %vm651_vm5  ;;  %vm1701_vm5 = vcmask 1041408  }
 0x54f   :  { %832 = vmin.xlane.f32.xlu0 %v830_v31  ;;  %v743_v50 = vpop.xlane.xlu0 %742  ;;  %v938_v21 = vsel %vm653_vm7, 1.0, %v1057_v60 }
 0x550   :  { %vm746_vm13 = vcmp.gt.f32.partialorder %v1393_v11, %v743_v50  ;;  %v679_v44 = vrot.slane %v938_v21, 6 }
 0x551   :  { %vm1493_vm14 = vmand %vm632_vm6, %vm746_vm13 }
 0x552   :  { %v750_v27 = vsel %vm1493_vm14, %v1393_v11, 128.0 }
 0x553   :  { %752 = vmin.xlane.f32.xlu0 %v750_v27 }
 0x560   :  { %v1500_v33 = vpop.xlane.xlu1 %824 }
 0x561   :  { %vm827_vm0 = vcmp.gt.f32.partialorder %v1393_v11, %v1500_v33 }
 0x562   :  { %vm1506_vm1 = vmand %vm1466_vm8, %vm827_vm0  ;;  %vm659_vm8 = vcmp.lt.f32.partialorder %v24_v24, 0.5 }
 0x563   :  { %v831_v3 = vsel %vm1506_vm1, %v1393_v11, 128.0  ;;  %vm661_vm13 = vmand %vm1698_vm15, %vm659_vm8  ;;  %vm1699_vm8 = vcmask 1042432  }
 0x564   :  { %834 = vmin.xlane.f32.xlu1 %v831_v3  ;;  %v745_v37 = vpop.xlane.xlu1 %744  ;;  %vm649_vm0 = vmand %vm644_vm10, %vm629_vm11  ;;  %v940_v53 = vsel %vm661_vm13, 1.0, %v1057_v60  ;;  %vm1700_vm10 = vcmask 1043456  }
 0x565   :  { %vm747_vm2 = vcmp.gt.f32.partialorder %v1393_v11, %v745_v37  ;;  %vm667_vm7 = vmand %vm649_vm0, %vm632_vm6  ;;  %v685_v55 = vrot.slane %v940_v53, 5  ;;  %v944_v47 = vsel %vm649_vm0, 1.0, %v1057_v60  ;;  %vm1702_vm0 = vcmask 1044480  }
 0x566   :  { %vm1516_vm3 = vmand %vm633_vm9, %vm747_vm2  ;;  %vm713_vm2 = vcmask 1040384   ;;  %v942_v57 = vsel %vm667_vm7, 1.0, %v1057_v60  ;;  %v706_v9 = vrot.slane %v944_v47, %v1212_v41  ;;  %vm652_vm7 = vcmp.ge.f32.partialorder %v25_v16, 0.5 }
 0x567   :  { %v751_v45 = vsel %vm1516_vm3, %v1393_v11, 128.0  ;;  %v714_v1 = vsel %vm713_vm2, %v934_v52, %v936_v36  ;;  %v694_v58 = vrot.slane %v942_v57, %v1212_v41  ;;  %v715_v30 = vsel %vm713_vm2, %v935_v12, %v937_v39 }
 0x568   :  { %754 = vmin.xlane.f32.xlu1 %v751_v45  ;;  %v717_v48 = vsel %vm1701_vm5, %v714_v1, %v679_v44  ;;  %vm731_vm5 = vcmask 1046528   ;;  %vm1731_vm2 = vcmask 1043456  }
 0x569   :  { %v720_v46 = vsel %vm1699_vm8, %v717_v48, %v685_v55  ;;  %vm728_vm8 = vcmask 1045504  }
 0x56a   :  { %v723_v51 = vsel %vm1700_vm10, %v720_v46, %v694_v58  ;;  %vm660_vm10 = vcmp.lt.f32.partialorder %v25_v16, 0.5 }
 0x56b   :  { %v726_v49 = vsel %vm1702_vm0, %v723_v51, %v706_v9  ;;  %vm645_vm0 = vcmp.gt.f32.partialorder %v25_v16, 0.8 }
 0x56c   :  { %v729_v54 = vsel %vm728_vm8, %v726_v49, 0.0 }
 0x56d   :  { %v732_v63 = vsel %vm731_vm5, %v729_v54, 0.0 }
 0x5d8   :  { %v1547_v61 = vpop.xlane.xlu0 %832 }
 0x5d9   :  { %vm836_vm6 = vcmp.gt.f32.partialorder %v1393_v11, %v1547_v61 }
 0x5da   :  { %vm1558_vm13 = vmand %vm1483_vm12, %vm836_vm6 }
 0x5db   :  { %v840_v7 = vsel %vm1558_vm13, %v1393_v11, 128.0  ;;  %vm654_vm6 = vmand %vm633_vm9, %vm652_vm7  ;;  %vm1727_vm7 = vcmask 1041408  }
 0x5dc   :  { %842 = vmin.xlane.f32.xlu0 %v840_v7  ;;  %v753_v13 = vpop.xlane.xlu0 %752  ;;  %v939_v38 = vsel %vm654_vm6, 1.0, %v1057_v60 }
 0x5dd   :  { %vm756_vm15 = vcmp.gt.f32.partialorder %v1393_v11, %v753_v13  ;;  %v680_v17 = vrot.slane %v939_v38, 6 }
 0x5de   :  { %vm1570_vm12 = vmand %vm1493_vm14, %vm756_vm15 }
 0x5df   :  { %v760_v59 = vsel %vm1570_vm12, %v1393_v11, 128.0  ;;  %vm662_vm15 = vmand %vm635_vm4, %vm660_vm10  ;;  %v718_v5 = vsel %vm1727_vm7, %v715_v30, %v680_v17 }
 0x5e0   :  { %762 = vmin.xlane.f32.xlu0 %v760_v59  ;;  %vm650_vm14 = vmand %vm645_vm0, %vm629_vm11  ;;  %v941_v15 = vsel %vm662_vm15, 1.0, %v1057_v60  ;;  %vm1728_vm11 = vcmask 1042432   ;;  %vm1732_vm15 = vcmask 1044480  }
 0x5e1   :  { %vm668_vm10 = vmand %vm650_vm14, %vm633_vm9  ;;  %v686_v18 = vrot.slane %v941_v15, 5  ;;  %v945_v20 = vsel %vm650_vm14, 1.0, %v1057_v60 }
 0x5e2   :  { %v943_v40 = vsel %vm668_vm10, 1.0, %v1057_v60  ;;  %v710_v26 = vrot.slane %v945_v20, %v1212_v41 }
 0x5e3   :  { %v721_v42 = vsel %vm1728_vm11, %v718_v5, %v686_v18  ;;  %v698_v25 = vrot.slane %v943_v40, %v1212_v41 }
 0x5e4   :  { %734 = vadd.xlane.f32.xlu0 %v732_v63 }
 0x5e5   :  { %v724_v31 = vsel %vm1731_vm2, %v721_v42, %v698_v25 }
 0x5e6   :  { %v727_v32 = vsel %vm1732_vm15, %v724_v31, %v710_v26 }
 0x5e7   :  { %v730_v22 = vsel %vm728_vm8, %v727_v32, 0.0 }
 0x5e8   :  { %v733_v3 = vsel %vm731_vm5, %v730_v22, 0.0 }
 0x5ed   :  { %v1600_v0 = vpop.xlane.xlu1 %834 }
 0x5ee   :  { %vm837_vm0 = vcmp.gt.f32.partialorder %v1393_v11, %v1600_v0 }
 0x5ef   :  { %vm1608_vm9 = vmand %vm1506_vm1, %vm837_vm0 }
 0x5f0   :  { %v841_v60 = vsel %vm1608_vm9, %v1393_v11, 128.0 }
 0x5f1   :  { %844 = vmin.xlane.f32.xlu1 %v841_v60  ;;  %v755_v50 = vpop.xlane.xlu1 %754 }
 0x5f2   :  { %vm757_vm6 = vcmp.gt.f32.partialorder %v1393_v11, %v755_v50 }
 0x5f3   :  { %vm1620_vm14 = vmand %vm1516_vm3, %vm757_vm6 }
 0x5f4   :  { %v761_v27 = vsel %vm1620_vm14, %v1393_v11, 128.0 }
 0x5f5   :  { %764 = vmin.xlane.f32.xlu1 %v761_v27 }
 0x5f9   :  { %736 = vadd.xlane.f32.xlu1 %v733_v3 }
 0x665   :  { %v843_v37 = vpop.xlane.xlu0 %842 }
 0x666   :  { %vm846_vm1 = vcmp.gt.f32.partialorder %v1393_v11, %v843_v37 }
 0x667   :  { %vm848_vm10 = vmand %vm1558_vm13, %vm846_vm1 }
 0x668   :  { %v850_v43 = vsel %vm848_vm10, %v1393_v11, 128.0 }
 0x669   :  { %v763_v45 = vpop.xlane.xlu0 %762  ;;  %852 = vmin.xlane.f32.xlu0 %v850_v43 }
 0x66a   :  { %vm766_vm3 = vcmp.gt.f32.partialorder %v1393_v11, %v763_v45 }
 0x66b   :  { %vm1636_vm7 = vmand %vm1570_vm12, %vm766_vm3 }
 0x66c   :  { %v770_v21 = vsel %vm1636_vm7, %v1393_v11, 128.0 }
 0x66d   :  { %772 = vmin.xlane.f32.xlu0 %v770_v21  ;;  %v735_v36 = vpop.xlane.xlu0 %734 }
 0x66e   :  { %738 = vst [vmem:[#allocation4] sm:$0xff] %v735_v36 }
 0x67a   :  { %v1643_v52 = vpop.xlane.xlu1 %844 }
 0x67b   :  { %vm847_vm5 = vcmp.gt.f32.partialorder %v1393_v11, %v1643_v52 }
 0x67c   :  { %vm849_vm8 = vmand %vm1608_vm9, %vm847_vm5 }
 0x67d   :  { %v851_v53 = vsel %vm849_vm8, %v1393_v11, 128.0 }
 0x67e   :  { %v765_v44 = vpop.xlane.xlu1 %764  ;;  %854 = vmin.xlane.f32.xlu1 %v851_v53 }
 0x67f   :  { %vm767_vm13 = vcmp.gt.f32.partialorder %v1393_v11, %v765_v44 }
 0x680   :  { %vm1653_vm12 = vmand %vm1620_vm14, %vm767_vm13 }
 0x681   :  { %v771_v1 = vsel %vm1653_vm12, %v1393_v11, 128.0 }
 0x682   :  { %774 = vmin.xlane.f32.xlu1 %v771_v1  ;;  %v737_v48 = vpop.xlane.xlu1 %736 }
 0x683   :  { %739 = vst [vmem:[#allocation4 + $0x8] sm:$0xff] %v737_v48 }
 0x684   :  { %1013 = shalt.err (!%p1010_p4)
}
 0x685   :  { %s1060_s8 = smov 128   ;;  %s1061_s9 = smov 8   ;;  %v856_v57 = vmin.f32 %v735_v36, 4.0  ;;  %v857_v6 = vmin.f32 %v737_v48, 4.0  ;;  %vm1739_vm3 = vcmp.eq.f32.partialorder %v1397_v35, 0.0 }
 0x686   :  { %921 = dma.vmem_to_hbm [thread:$0]  %s916_s6, 256, %s1697_s4, [#allocation5], %s1060_s8, %s1060_s8, %s1061_s9  }
 0x687   :  { %v858_v47 = vsub.f32 8.0, %v856_v57  ;;  %v859_v7 = vsub.f32 8.0, %v857_v6  ;;  %s1062_s4 = smov [#allocation2]  }
 0x688   :  { %s903_s12 = sshll.u32 %s1062_s4, 4  ;;  %s904_s12 = int_to_ptr.vmem [resolvable:$true] %s903_s12 }
 0x689   :  { %vm860_vm11 = vcmp.ge.f32.partialorder %v858_v47, 2.0  ;;  %vm864_vm0 = vcmp.ge.f32.partialorder %v858_v47, 3.0  ;;  %vm868_vm9 = vcmp.ge.f32.partialorder %v858_v47, 4.0  ;;  %vm872_vm2 = vcmp.ge.f32.partialorder %v858_v47, 5.0  ;;  %s1022_s13 = scalar_lea.vmem %s904_s12, 32  ;;  %p1027_p6 = scmp.lt.s32.totalorder %s904_s12, %s904_s12 }
 0x68a   :  { %v862_v46 = vsel %vm860_vm11, %v1427_v62, %v1413_v14  ;;  %vm876_vm6 = vcmp.ge.f32.partialorder %v858_v47, 6.0  ;;  %vm880_vm15 = vcmp.ge.f32.partialorder %v858_v47, 7.0  ;;  %vm884_vm14 = vcmp.ge.f32.partialorder %v858_v47, 8.0  ;;  %p1023_p5 = scmp.ne.s32.totalorder %s904_s12, %s1022_s13  ;;  %p1028_p7 = scmp.lt.s32.totalorder %s1022_s13, %s1022_s13 }
 0x68b   :  { %v866_v58 = vsel %vm864_vm0, %v1437_v4, %v862_v46  ;;  %vm861_vm10 = vcmp.ge.f32.partialorder %v859_v7, 2.0  ;;  %vm865_vm11 = vcmp.ge.f32.partialorder %v859_v7, 3.0 }
 0x68c   :  { %v870_v9 = vsel %vm868_vm9, %v1447_v56, %v866_v58  ;;  %v863_v62 = vsel %vm861_vm10, %v1432_v2, %v1420_v10  ;;  %vm869_vm9 = vcmp.ge.f32.partialorder %v859_v7, 4.0  ;;  %p1029_p8 = por %p1028_p7, %p1027_p6 }
 0x68d   :  { %v874_v16 = vsel %vm872_vm2, %v1477_v28, %v870_v9  ;;  %v867_v56 = vsel %vm865_vm11, %v1442_v19, %v863_v62  ;;  %vm873_vm2 = vcmp.ge.f32.partialorder %v859_v7, 5.0 }
 0x68e   :  { %v878_v51 = vsel %vm876_vm6, %v1547_v61, %v874_v16  ;;  %v871_v28 = vsel %vm869_vm9, %v1462_v23, %v867_v56  ;;  %vm877_vm6 = vcmp.ge.f32.partialorder %v859_v7, 6.0  ;;  %p1030_p9 = pnand %p1029_p8, %p1023_p5 }
 0x68f   :  { %v882_v13 = vsel %vm880_vm15, %v843_v37, %v878_v51  ;;  %v875_v61 = vsel %vm873_vm2, %v1500_v33, %v871_v28  ;;  %vm885_vm15 = vcmp.ge.f32.partialorder %v859_v7, 8.0 }
 0x690   :  { %v879_v59 = vsel %vm877_vm6, %v1600_v0, %v875_v61 }
 0x6f2   :  { %v853_v49 = vpop.xlane.xlu0 %852 }
 0x6f3   :  { %v886_v34 = vsel %vm884_vm14, %v853_v49, %v882_v13 }
 0x6f4   :  { %vm888_vm1 = vcmp.gt.f32.partialorder %v1393_v11, %v886_v34 }
 0x6f5   :  { %vm890_vm5 = vmand %vm1739_vm3, %vm888_vm1 }
 0x6f6   :  { %v773_v14 = vpop.xlane.xlu0 %772 }
 0x6f7   :  { %vm776_vm8 = vcmp.gt.f32.partialorder %v1393_v11, %v773_v14 }
 0x6f8   :  { %vm778_vm13 = vmand %vm1636_vm7, %vm776_vm8  ;;  %vm881_vm7 = vcmp.ge.f32.partialorder %v859_v7, 7.0 }
 0x6f9   :  { %vm892_vm0 = vmor %vm778_vm13, %vm890_vm5  ;;  %v883_v54 = vsel %vm881_vm7, %v1643_v52, %v879_v59 }
 0x6fa   :  { %v894_v4 = vsel %vm892_vm0, -1.0, %v1397_v35 }
 0x6fb   :  { %896 = vst [vmem:[#allocation2] sm:$0x1] %v894_v4 }
 0x707   :  { %v855_v10 = vpop.xlane.xlu1 %854 }
 0x708   :  { %v887_v2 = vsel %vm885_vm15, %v855_v10, %v883_v54 }
 0x709   :  { %vm889_vm14 = vcmp.gt.f32.partialorder %v1393_v11, %v887_v2 }
 0x70a   :  { %vm891_vm1 = vmand %vm635_vm4, %vm889_vm14 }
 0x70b   :  { %v775_v35 = vpop.xlane.xlu1 %774 }
 0x70c   :  { %vm777_vm10 = vcmp.gt.f32.partialorder %v1393_v11, %v775_v35 }
 0x70d   :  { %vm779_vm3 = vmand %vm1653_vm12, %vm777_vm10 }
 0x70e   :  { %vm893_vm5 = vmor %vm779_vm3, %vm891_vm1 }
 0x70f   :  { %v895_v19 = vsel %vm893_vm5, -1.0, %v1407_v8 }
 0x710   :  { %897 = vst [vmem:[#allocation2 + $0x1] sm:$0x1] %v895_v19 }
 0x711   :  { %1033 = shalt.err (!%p1030_p9)
}
 0x712   :  { %s1063_s14 = smov 16   ;;  %s1064_s15 = smov 1  }
 0x713   :  { %909 = dma.vmem_to_hbm [thread:$0]  %s904_s12, 32, %s1696_s3, [#allocation3], %s1063_s14, %s1063_s14, %s1064_s15  }
 0x714   :  { %1042 = dma.done.wait [#allocation3], 32  }
 0x715   :  { %1043 = vsyncadd [#allocation3], 4294967264 }
 0x716   :  { %1044 = dma.done.wait [#allocation5], 256  }
 0x717   :  { %1045 = vsyncadd [#allocation5], 4294967040 }
 0x718   :  { %928 = vsyncpa [#allocation3], 1 }
 0x719   :  { %929 = vsyncpa [#allocation5], 1 }

</bundles_post_ra>
